<compile_context>
chip_gen: v5e
topology: v5e:2x2
jax: 0.10.0
libtpu: 0.0.40
codegen_flags: <defaults>
</compile_context>

<pallas_src>
import jax
import jax.numpy as jnp
from jax.experimental import pallas as pl
from jax.experimental.pallas import tpu as pltpu

K = 5                      # Conv1d kernel_size in cnn_liu
COUTS = (64, 32, 32)       # conv1/conv2/conv3 output channels


# ---------------------------------------------------------------------------
# Fused forward kernel (one grid step == TB batch elements)
# ---------------------------------------------------------------------------
def mf_cnn_kernel(x_ref, wc1_ref, bc1_ref, wc2_ref, bc2_ref, wc3_ref, bc3_ref,
                  w1_ref, b1_ref, w23_ref, b23_ref, o_ref):
    tb = o_ref.shape[0]
    lc1, _, kcin = x_ref.shape

    def pool_relu(a):
        # a: (lc*tb, C) conv rows, row index = t*tb + b (time-major).
        # MaxPool1d(2,2) + ReLU: regroup time pairs into 2*tb-row slabs and max
        # the two tb-halves -- aligned sublane slices, no strided access.
        lc_tb, c = a.shape
        v = a.reshape(lc_tb // (2 * tb), 2 * tb, c)
        return jnp.maximum(jnp.maximum(v[:, :tb, :], v[:, tb:, :]), 0.0)

    def conv_block(y, w_ref, b_ref):
        # y: (lp, tb, c_in) pooled+relu'd activations (time-major slabs).
        # Conv1d(k=5, stride=1, valid) as K accumulating MXU matmuls over
        # leading-axis slab slices y[k:k+lc] -- relayout-free.
        lp, _, c_in = y.shape
        lc = lp - (K - 1)
        acc = None
        for k in range(K):
            xk = y[k:k + lc].reshape(lc * tb, c_in).astype(jnp.bfloat16)
            d = jnp.dot(xk, w_ref[k], preferred_element_type=jnp.float32)
            acc = d if acc is None else acc + d
        return acc + b_ref[...]

    # ---- stage 1: conv1 is ONE matmul (im2col was done in the wrapper) -----
    x2d = x_ref[...].reshape(lc1 * tb, kcin).astype(jnp.bfloat16)
    a1 = jnp.dot(x2d, wc1_ref[...],
                 preferred_element_type=jnp.float32) + bc1_ref[...]
    y1 = pool_relu(a1)                                  # (lp1, tb, 64)

    # ---- stage 2 / stage 3: K accumulating matmuls per conv ----------------
    a2 = conv_block(y1, wc2_ref, bc2_ref)
    y2 = pool_relu(a2)                                  # (lp2, tb, 32)

    a3 = conv_block(y2, wc3_ref, bc3_ref)
    y3 = pool_relu(a3)                                  # (hidden, tb, 32)

    # ---- fc1 as `hidden` accumulating matmuls over the flatten positions ---
    hidden = y3.shape[0]
    h = None
    for t in range(hidden):
        d = jnp.dot(y3[t].astype(jnp.bfloat16), w1_ref[t],
                    preferred_element_type=jnp.float32)
        h = d if h is None else h + d
    h = jnp.maximum(h + b1_ref[...], 0.0)               # sk = relu(fc1(x))

    # ---- fc3(fc2(sk)) + sk (fc2.fc3 folded in the wrapper) -----------------
    out = jnp.dot(h.astype(jnp.bfloat16), w23_ref[...],
                  preferred_element_type=jnp.float32) + b23_ref[...]
    o_ref[...] = (out + h).astype(o_ref.dtype)


# ---------------------------------------------------------------------------
# Wrapper: parameter pre-processing + single pallas_call
# ---------------------------------------------------------------------------
def mf_cnn_forward(x_ncl, params, *, tb=None):
    # x_ncl: (B, Cin, L) -- PyTorch NCL input convention.
    x = jnp.transpose(x_ncl, (0, 2, 1)).astype(jnp.float32)     # -> (B, L, Cin)
    B, L, Cin = x.shape

    # Static conv / pool output lengths.
    lc1 = L - (K - 1)
    lc2 = lc1 // 2 - (K - 1)
    lc3 = lc2 // 2 - (K - 1)
    hidden = lc3 // 2
    assert lc1 % 2 == 0 and lc2 % 2 == 0 and lc3 % 2 == 0, \
        "MaxPool1d(2,2) would drop a row (odd conv length)"

    # Batch tile: multiple of 8 (full sublane groups for the time-major slabs);
    # >=2 grid steps when B allows so both v7x TensorCores get work.
    if tb is None:
        tb = min(128, 8 * max(1, (B + 15) // 16))
    bp = ((B + tb - 1) // tb) * tb
    if bp != B:                                  # pad batch; rows are independent
        x = jnp.concatenate([x, jnp.zeros((bp - B, L, Cin), x.dtype)], axis=0)

    # Stage-1 im2col in the wrapper, laid out time-major: (Lc1, Bp, K*Cin), f32.
    xt = jnp.transpose(x, (1, 0, 2))                             # (L, Bp, Cin)
    x1 = jnp.concatenate([xt[k:k + lc1] for k in range(K)], axis=-1)

    # Weights as bf16 MXU operands (accumulation stays f32 in-kernel).
    wc1 = params["w_c1"].reshape(K * Cin, COUTS[0]).astype(jnp.bfloat16)
    wc2 = params["w_c2"].astype(jnp.bfloat16)                    # (K, 64, 32)
    wc3 = params["w_c3"].astype(jnp.bfloat16)                    # (K, 32, 32)
    # fc1 split per flatten position: w1s[t] = rows c*hidden + t of w1
    # (matches torch's channel-major x.view(B, -1) on the NCL tensor).
    w1s = (params["w1"].reshape(COUTS[2], hidden, 128)
           .transpose(1, 0, 2).astype(jnp.bfloat16))             # (hidden, 32, 128)
    # Fold fc2 . fc3 (no nonlinearity between them) in f32, then cast.
    w23 = jnp.dot(params["w2"], params["w3"]).astype(jnp.bfloat16)
    b23 = (jnp.dot(params["b2"], params["w3"]) + params["b3"]).astype(jnp.float32)
    bc1, bc2, bc3, b1 = (params["b_c1"], params["b_c2"],
                         params["b_c3"], params["b1"])

    def rep(a):  # full-array block, resident across the batch grid
        nd = a.ndim
        return pl.BlockSpec(a.shape, lambda i, nd=nd: (0,) * nd)

    out = pl.pallas_call(
        mf_cnn_kernel,
        out_shape=jax.ShapeDtypeStruct((bp, 128), jnp.float32),
        grid_spec=pltpu.PrefetchScalarGridSpec(
            num_scalar_prefetch=0,
            grid=(bp // tb,),
            in_specs=[
                pl.BlockSpec((lc1, tb, K * Cin), lambda i: (0, i, 0)),
                rep(wc1), rep(bc1),
                rep(wc2), rep(bc2),
                rep(wc3), rep(bc3),
                rep(w1s), rep(b1),
                rep(w23), rep(b23),
            ],
            out_specs=pl.BlockSpec((tb, 128), lambda i: (i, 0)),
        ),
        compiler_params=pltpu.CompilerParams(
            dimension_semantics=("parallel",)),
    )(x1, wc1, bc1, wc2, bc2, wc3, bc3, w1s, b1, w23, b23)
    return out[:B]


# ---------------------------------------------------------------------------
# Pure-JAX reference (mirrors the PyTorch module structure) for validation
# ---------------------------------------------------------------------------
def mf_cnn_reference(x_ncl, params):
    x = jnp.transpose(x_ncl, (0, 2, 1)).astype(jnp.float32)     # NLC
    for i in range(3):
        w, b = params[f"w_c{i + 1}"], params[f"b_c{i + 1}"]
        lc = x.shape[1] - (K - 1)
        acc = sum(jnp.einsum("blc,co->blo", x[:, k:k + lc, :], w[k])
                  for k in range(K)) + b
        acc = acc.reshape(acc.shape[0], lc // 2, 2, acc.shape[-1])
        x = jnp.maximum(jnp.max(acc, axis=2), 0.0)
    B = x.shape[0]
    flat = jnp.transpose(x, (0, 2, 1)).reshape(B, -1)            # channel-major
    h = jnp.maximum(flat @ params["w1"] + params["b1"], 0.0)
    y = h @ params["w2"] + params["b2"]
    y = y @ params["w3"] + params["b3"]
    return y + h


# ---------------------------------------------------------------------------
# Deterministic synthetic parameters (PyTorch-style uniform(-1/sqrt(fan_in)))
# ---------------------------------------------------------------------------
def init_params(key, in_channel, hidden_size):
    ks = jax.random.split(key, 12)

    def u(k, shape, fan_in):
        bound = 1.0 / float(fan_in) ** 0.5
        return jax.random.uniform(k, shape, jnp.float32, -bound, bound)

    p = {}
    cin = in_channel
    for i, cout in enumerate(COUTS):
        fan = cin * K
        # stored as (K, Cin, Cout); PyTorch Conv1d weight is (Cout, Cin, K)
        p[f"w_c{i + 1}"] = u(ks[2 * i], (K, cin, cout), fan)
        p[f"b_c{i + 1}"] = u(ks[2 * i + 1], (1, cout), fan)
        cin = cout
    fcs = [(32 * hidden_size, 128), (128, 128), (128, 128)]
    for i, (fin, fout) in enumerate(fcs):
        # stored as (in, out) == torch_weight.T, rows in torch flatten order
        p[f"w{i + 1}"] = u(ks[6 + 2 * i], (fin, fout), fin)
        p[f"b{i + 1}"] = u(ks[7 + 2 * i], (1, fout), fin)
    return p


if __name__ == "__main__":
    # Small config consistent with the module:
    #   seq 60 --conv--> 56 --pool--> 28 --conv--> 24 --pool--> 12
    #          --conv--> 8  --pool--> 4  => hidden_size = 4, flatten = 32*4 = 128
    in_channel, hidden_size, seq_len, batch = 8, 4, 60, 16

    key = jax.random.PRNGKey(0)
    kx, kp = jax.random.split(key)
    x = jax.random.normal(kx, (batch, in_channel, seq_len), jnp.float32)
    params = init_params(kp, in_channel, hidden_size)

    out = jax.jit(mf_cnn_forward)(x, params)
    out = jax.block_until_ready(out)
    assert out.shape == (batch, 128) and out.dtype == jnp.float32
    assert bool(jnp.all(jnp.isfinite(out)))

    ref = mf_cnn_reference(x, params)
    max_err = float(jnp.max(jnp.abs(out - ref)))
    assert jnp.allclose(out, ref, rtol=5e-2, atol=5e-2), f"max_err={max_err}"

    print("KERNEL_OK")
</pallas_src>

<mosaic_0001>
module attributes {stable_mosaic.version = 11 : i64} {
  func.func @mf_cnn_kernel(%arg0: i32, %arg1: memref<56x8x40xf32, #tpu.memory_space<vmem>>, %arg2: memref<40x64xbf16, #tpu.memory_space<vmem>>, %arg3: memref<1x64xf32, #tpu.memory_space<vmem>>, %arg4: memref<5x64x32xbf16, #tpu.memory_space<vmem>>, %arg5: memref<1x32xf32, #tpu.memory_space<vmem>>, %arg6: memref<5x32x32xbf16, #tpu.memory_space<vmem>>, %arg7: memref<1x32xf32, #tpu.memory_space<vmem>>, %arg8: memref<4x32x128xbf16, #tpu.memory_space<vmem>>, %arg9: memref<1x128xf32, #tpu.memory_space<vmem>>, %arg10: memref<128x128xbf16, #tpu.memory_space<vmem>>, %arg11: memref<1x128xf32, #tpu.memory_space<vmem>>, %arg12: memref<8x128xf32, #tpu.memory_space<vmem>>) attributes {dimension_semantics = [#tpu.dimension_semantics<parallel>], iteration_bounds = array<i64: 2>, scalar_prefetch = 0 : i64, scratch_operands = 0 : i64, tpu.core_type = #tpu.core_type<tc>, window_params = [{transform_indices = @transform_0, window_bounds = array<i64: 56, 8, 40>}, {pipeline_mode = #tpu.pipeline_mode<synchronous>, transform_indices = @transform_1, window_bounds = array<i64: 40, 64>}, {pipeline_mode = #tpu.pipeline_mode<synchronous>, transform_indices = @transform_2, window_bounds = array<i64: 1, 64>}, {pipeline_mode = #tpu.pipeline_mode<synchronous>, transform_indices = @transform_3, window_bounds = array<i64: 5, 64, 32>}, {pipeline_mode = #tpu.pipeline_mode<synchronous>, transform_indices = @transform_4, window_bounds = array<i64: 1, 32>}, {pipeline_mode = #tpu.pipeline_mode<synchronous>, transform_indices = @transform_5, window_bounds = array<i64: 5, 32, 32>}, {pipeline_mode = #tpu.pipeline_mode<synchronous>, transform_indices = @transform_6, window_bounds = array<i64: 1, 32>}, {pipeline_mode = #tpu.pipeline_mode<synchronous>, transform_indices = @transform_7, window_bounds = array<i64: 4, 32, 128>}, {pipeline_mode = #tpu.pipeline_mode<synchronous>, transform_indices = @transform_8, window_bounds = array<i64: 1, 128>}, {pipeline_mode = #tpu.pipeline_mode<synchronous>, transform_indices = @transform_9, window_bounds = array<i64: 128, 128>}, {pipeline_mode = #tpu.pipeline_mode<synchronous>, transform_indices = @transform_10, window_bounds = array<i64: 1, 128>}, {transform_indices = @transform_11, window_bounds = array<i64: 8, 128>}]} {
    %c0 = arith.constant 0 : index
    %c0_0 = arith.constant 0 : index
    %c0_1 = arith.constant 0 : index
    %0 = vector.load %arg1[%c0, %c0_0, %c0_1] : memref<56x8x40xf32, #tpu.memory_space<vmem>>, vector<56x8x40xf32>
    %1 = vector.shape_cast %0 : vector<56x8x40xf32> to vector<448x40xf32>
    %2 = arith.truncf %1 : vector<448x40xf32> to vector<448x40xbf16>
    %c0_2 = arith.constant 0 : index
    %c0_3 = arith.constant 0 : index
    %3 = vector.load %arg2[%c0_2, %c0_3] : memref<40x64xbf16, #tpu.memory_space<vmem>>, vector<40x64xbf16>
    %cst = arith.constant dense<0.000000e+00> : vector<448x64xf32>
    %4 = tpu.matmul %2, %3, %cst {dimension_numbers = #tpu.dot_dimension_numbers<[1], [0], [0], [1], [0, 0, 1, 1], [], []>} : vector<448x40xbf16>, vector<40x64xbf16>, vector<448x64xf32> -> vector<448x64xf32>
    %c0_4 = arith.constant 0 : index
    %c0_5 = arith.constant 0 : index
    %5 = vector.load %arg3[%c0_4, %c0_5] : memref<1x64xf32, #tpu.memory_space<vmem>>, vector<1x64xf32>
    %6 = vector.broadcast %5 : vector<1x64xf32> to vector<448x64xf32>
    %7 = arith.addf %4, %6 : vector<448x64xf32>
    %8 = vector.shape_cast %7 : vector<448x64xf32> to vector<28x16x64xf32>
    %9 = vector.extract_strided_slice %8 {offsets = [0, 0, 0], sizes = [28, 8, 64], strides = [1, 1, 1]} : vector<28x16x64xf32> to vector<28x8x64xf32>
    %10 = vector.extract_strided_slice %8 {offsets = [0, 8, 0], sizes = [28, 8, 64], strides = [1, 1, 1]} : vector<28x16x64xf32> to vector<28x8x64xf32>
    %11 = arith.maximumf %9, %10 : vector<28x8x64xf32>
    %cst_6 = arith.constant 0.000000e+00 : f32
    %12 = vector.broadcast %cst_6 : f32 to vector<28x8x64xf32>
    %13 = arith.maximumf %11, %12 : vector<28x8x64xf32>
    %14 = vector.extract_strided_slice %13 {offsets = [0, 0, 0], sizes = [24, 8, 64], strides = [1, 1, 1]} : vector<28x8x64xf32> to vector<24x8x64xf32>
    %15 = vector.shape_cast %14 : vector<24x8x64xf32> to vector<192x64xf32>
    %16 = arith.truncf %15 : vector<192x64xf32> to vector<192x64xbf16>
    %c0_7 = arith.constant 0 : index
    %c0_8 = arith.constant 0 : index
    %c0_9 = arith.constant 0 : index
    %17 = vector.load %arg4[%c0_7, %c0_8, %c0_9] : memref<5x64x32xbf16, #tpu.memory_space<vmem>>, vector<1x64x32xbf16>
    %18 = vector.shape_cast %17 : vector<1x64x32xbf16> to vector<64x32xbf16>
    %cst_10 = arith.constant dense<0.000000e+00> : vector<192x32xf32>
    %19 = tpu.matmul %16, %18, %cst_10 {dimension_numbers = #tpu.dot_dimension_numbers<[1], [0], [0], [1], [0, 0, 1, 1], [], []>} : vector<192x64xbf16>, vector<64x32xbf16>, vector<192x32xf32> -> vector<192x32xf32>
    %20 = vector.extract_strided_slice %13 {offsets = [1, 0, 0], sizes = [24, 8, 64], strides = [1, 1, 1]} : vector<28x8x64xf32> to vector<24x8x64xf32>
    %21 = vector.shape_cast %20 : vector<24x8x64xf32> to vector<192x64xf32>
    %22 = arith.truncf %21 : vector<192x64xf32> to vector<192x64xbf16>
    %c1 = arith.constant 1 : index
    %c0_11 = arith.constant 0 : index
    %c0_12 = arith.constant 0 : index
    %23 = vector.load %arg4[%c1, %c0_11, %c0_12] : memref<5x64x32xbf16, #tpu.memory_space<vmem>>, vector<1x64x32xbf16>
    %24 = vector.shape_cast %23 : vector<1x64x32xbf16> to vector<64x32xbf16>
    %cst_13 = arith.constant dense<0.000000e+00> : vector<192x32xf32>
    %25 = tpu.matmul %22, %24, %cst_13 {dimension_numbers = #tpu.dot_dimension_numbers<[1], [0], [0], [1], [0, 0, 1, 1], [], []>} : vector<192x64xbf16>, vector<64x32xbf16>, vector<192x32xf32> -> vector<192x32xf32>
    %26 = arith.addf %19, %25 : vector<192x32xf32>
    %27 = vector.extract_strided_slice %13 {offsets = [2, 0, 0], sizes = [24, 8, 64], strides = [1, 1, 1]} : vector<28x8x64xf32> to vector<24x8x64xf32>
    %28 = vector.shape_cast %27 : vector<24x8x64xf32> to vector<192x64xf32>
    %29 = arith.truncf %28 : vector<192x64xf32> to vector<192x64xbf16>
    %c2 = arith.constant 2 : index
    %c0_14 = arith.constant 0 : index
    %c0_15 = arith.constant 0 : index
    %30 = vector.load %arg4[%c2, %c0_14, %c0_15] : memref<5x64x32xbf16, #tpu.memory_space<vmem>>, vector<1x64x32xbf16>
    %31 = vector.shape_cast %30 : vector<1x64x32xbf16> to vector<64x32xbf16>
    %cst_16 = arith.constant dense<0.000000e+00> : vector<192x32xf32>
    %32 = tpu.matmul %29, %31, %cst_16 {dimension_numbers = #tpu.dot_dimension_numbers<[1], [0], [0], [1], [0, 0, 1, 1], [], []>} : vector<192x64xbf16>, vector<64x32xbf16>, vector<192x32xf32> -> vector<192x32xf32>
    %33 = arith.addf %26, %32 : vector<192x32xf32>
    %34 = vector.extract_strided_slice %13 {offsets = [3, 0, 0], sizes = [24, 8, 64], strides = [1, 1, 1]} : vector<28x8x64xf32> to vector<24x8x64xf32>
    %35 = vector.shape_cast %34 : vector<24x8x64xf32> to vector<192x64xf32>
    %36 = arith.truncf %35 : vector<192x64xf32> to vector<192x64xbf16>
    %c3 = arith.constant 3 : index
    %c0_17 = arith.constant 0 : index
    %c0_18 = arith.constant 0 : index
    %37 = vector.load %arg4[%c3, %c0_17, %c0_18] : memref<5x64x32xbf16, #tpu.memory_space<vmem>>, vector<1x64x32xbf16>
    %38 = vector.shape_cast %37 : vector<1x64x32xbf16> to vector<64x32xbf16>
    %cst_19 = arith.constant dense<0.000000e+00> : vector<192x32xf32>
    %39 = tpu.matmul %36, %38, %cst_19 {dimension_numbers = #tpu.dot_dimension_numbers<[1], [0], [0], [1], [0, 0, 1, 1], [], []>} : vector<192x64xbf16>, vector<64x32xbf16>, vector<192x32xf32> -> vector<192x32xf32>
    %40 = arith.addf %33, %39 : vector<192x32xf32>
    %41 = vector.extract_strided_slice %13 {offsets = [4, 0, 0], sizes = [24, 8, 64], strides = [1, 1, 1]} : vector<28x8x64xf32> to vector<24x8x64xf32>
    %42 = vector.shape_cast %41 : vector<24x8x64xf32> to vector<192x64xf32>
    %43 = arith.truncf %42 : vector<192x64xf32> to vector<192x64xbf16>
    %c4 = arith.constant 4 : index
    %c0_20 = arith.constant 0 : index
    %c0_21 = arith.constant 0 : index
    %44 = vector.load %arg4[%c4, %c0_20, %c0_21] : memref<5x64x32xbf16, #tpu.memory_space<vmem>>, vector<1x64x32xbf16>
    %45 = vector.shape_cast %44 : vector<1x64x32xbf16> to vector<64x32xbf16>
    %cst_22 = arith.constant dense<0.000000e+00> : vector<192x32xf32>
    %46 = tpu.matmul %43, %45, %cst_22 {dimension_numbers = #tpu.dot_dimension_numbers<[1], [0], [0], [1], [0, 0, 1, 1], [], []>} : vector<192x64xbf16>, vector<64x32xbf16>, vector<192x32xf32> -> vector<192x32xf32>
    %47 = arith.addf %40, %46 : vector<192x32xf32>
    %c0_23 = arith.constant 0 : index
    %c0_24 = arith.constant 0 : index
    %48 = vector.load %arg5[%c0_23, %c0_24] : memref<1x32xf32, #tpu.memory_space<vmem>>, vector<1x32xf32>
    %49 = vector.broadcast %48 : vector<1x32xf32> to vector<192x32xf32>
    %50 = arith.addf %47, %49 : vector<192x32xf32>
    %51 = vector.shape_cast %50 : vector<192x32xf32> to vector<12x16x32xf32>
    %52 = vector.extract_strided_slice %51 {offsets = [0, 0, 0], sizes = [12, 8, 32], strides = [1, 1, 1]} : vector<12x16x32xf32> to vector<12x8x32xf32>
    %53 = vector.extract_strided_slice %51 {offsets = [0, 8, 0], sizes = [12, 8, 32], strides = [1, 1, 1]} : vector<12x16x32xf32> to vector<12x8x32xf32>
    %54 = arith.maximumf %52, %53 : vector<12x8x32xf32>
    %cst_25 = arith.constant 0.000000e+00 : f32
    %55 = vector.broadcast %cst_25 : f32 to vector<12x8x32xf32>
    %56 = arith.maximumf %54, %55 : vector<12x8x32xf32>
    %57 = vector.extract_strided_slice %56 {offsets = [0, 0, 0], sizes = [8, 8, 32], strides = [1, 1, 1]} : vector<12x8x32xf32> to vector<8x8x32xf32>
    %58 = vector.shape_cast %57 : vector<8x8x32xf32> to vector<64x32xf32>
    %59 = arith.truncf %58 : vector<64x32xf32> to vector<64x32xbf16>
    %c0_26 = arith.constant 0 : index
    %c0_27 = arith.constant 0 : index
    %c0_28 = arith.constant 0 : index
    %60 = vector.load %arg6[%c0_26, %c0_27, %c0_28] : memref<5x32x32xbf16, #tpu.memory_space<vmem>>, vector<1x32x32xbf16>
    %61 = vector.shape_cast %60 : vector<1x32x32xbf16> to vector<32x32xbf16>
    %cst_29 = arith.constant dense<0.000000e+00> : vector<64x32xf32>
    %62 = tpu.matmul %59, %61, %cst_29 {dimension_numbers = #tpu.dot_dimension_numbers<[1], [0], [0], [1], [0, 0, 1, 1], [], []>} : vector<64x32xbf16>, vector<32x32xbf16>, vector<64x32xf32> -> vector<64x32xf32>
    %63 = vector.extract_strided_slice %56 {offsets = [1, 0, 0], sizes = [8, 8, 32], strides = [1, 1, 1]} : vector<12x8x32xf32> to vector<8x8x32xf32>
    %64 = vector.shape_cast %63 : vector<8x8x32xf32> to vector<64x32xf32>
    %65 = arith.truncf %64 : vector<64x32xf32> to vector<64x32xbf16>
    %c1_30 = arith.constant 1 : index
    %c0_31 = arith.constant 0 : index
    %c0_32 = arith.constant 0 : index
    %66 = vector.load %arg6[%c1_30, %c0_31, %c0_32] : memref<5x32x32xbf16, #tpu.memory_space<vmem>>, vector<1x32x32xbf16>
    %67 = vector.shape_cast %66 : vector<1x32x32xbf16> to vector<32x32xbf16>
    %cst_33 = arith.constant dense<0.000000e+00> : vector<64x32xf32>
    %68 = tpu.matmul %65, %67, %cst_33 {dimension_numbers = #tpu.dot_dimension_numbers<[1], [0], [0], [1], [0, 0, 1, 1], [], []>} : vector<64x32xbf16>, vector<32x32xbf16>, vector<64x32xf32> -> vector<64x32xf32>
    %69 = arith.addf %62, %68 : vector<64x32xf32>
    %70 = vector.extract_strided_slice %56 {offsets = [2, 0, 0], sizes = [8, 8, 32], strides = [1, 1, 1]} : vector<12x8x32xf32> to vector<8x8x32xf32>
    %71 = vector.shape_cast %70 : vector<8x8x32xf32> to vector<64x32xf32>
    %72 = arith.truncf %71 : vector<64x32xf32> to vector<64x32xbf16>
    %c2_34 = arith.constant 2 : index
    %c0_35 = arith.constant 0 : index
    %c0_36 = arith.constant 0 : index
    %73 = vector.load %arg6[%c2_34, %c0_35, %c0_36] : memref<5x32x32xbf16, #tpu.memory_space<vmem>>, vector<1x32x32xbf16>
    %74 = vector.shape_cast %73 : vector<1x32x32xbf16> to vector<32x32xbf16>
    %cst_37 = arith.constant dense<0.000000e+00> : vector<64x32xf32>
    %75 = tpu.matmul %72, %74, %cst_37 {dimension_numbers = #tpu.dot_dimension_numbers<[1], [0], [0], [1], [0, 0, 1, 1], [], []>} : vector<64x32xbf16>, vector<32x32xbf16>, vector<64x32xf32> -> vector<64x32xf32>
    %76 = arith.addf %69, %75 : vector<64x32xf32>
    %77 = vector.extract_strided_slice %56 {offsets = [3, 0, 0], sizes = [8, 8, 32], strides = [1, 1, 1]} : vector<12x8x32xf32> to vector<8x8x32xf32>
    %78 = vector.shape_cast %77 : vector<8x8x32xf32> to vector<64x32xf32>
    %79 = arith.truncf %78 : vector<64x32xf32> to vector<64x32xbf16>
    %c3_38 = arith.constant 3 : index
    %c0_39 = arith.constant 0 : index
    %c0_40 = arith.constant 0 : index
    %80 = vector.load %arg6[%c3_38, %c0_39, %c0_40] : memref<5x32x32xbf16, #tpu.memory_space<vmem>>, vector<1x32x32xbf16>
    %81 = vector.shape_cast %80 : vector<1x32x32xbf16> to vector<32x32xbf16>
    %cst_41 = arith.constant dense<0.000000e+00> : vector<64x32xf32>
    %82 = tpu.matmul %79, %81, %cst_41 {dimension_numbers = #tpu.dot_dimension_numbers<[1], [0], [0], [1], [0, 0, 1, 1], [], []>} : vector<64x32xbf16>, vector<32x32xbf16>, vector<64x32xf32> -> vector<64x32xf32>
    %83 = arith.addf %76, %82 : vector<64x32xf32>
    %84 = vector.extract_strided_slice %56 {offsets = [4, 0, 0], sizes = [8, 8, 32], strides = [1, 1, 1]} : vector<12x8x32xf32> to vector<8x8x32xf32>
    %85 = vector.shape_cast %84 : vector<8x8x32xf32> to vector<64x32xf32>
    %86 = arith.truncf %85 : vector<64x32xf32> to vector<64x32xbf16>
    %c4_42 = arith.constant 4 : index
    %c0_43 = arith.constant 0 : index
    %c0_44 = arith.constant 0 : index
    %87 = vector.load %arg6[%c4_42, %c0_43, %c0_44] : memref<5x32x32xbf16, #tpu.memory_space<vmem>>, vector<1x32x32xbf16>
    %88 = vector.shape_cast %87 : vector<1x32x32xbf16> to vector<32x32xbf16>
    %cst_45 = arith.constant dense<0.000000e+00> : vector<64x32xf32>
    %89 = tpu.matmul %86, %88, %cst_45 {dimension_numbers = #tpu.dot_dimension_numbers<[1], [0], [0], [1], [0, 0, 1, 1], [], []>} : vector<64x32xbf16>, vector<32x32xbf16>, vector<64x32xf32> -> vector<64x32xf32>
    %90 = arith.addf %83, %89 : vector<64x32xf32>
    %c0_46 = arith.constant 0 : index
    %c0_47 = arith.constant 0 : index
    %91 = vector.load %arg7[%c0_46, %c0_47] : memref<1x32xf32, #tpu.memory_space<vmem>>, vector<1x32xf32>
    %92 = vector.broadcast %91 : vector<1x32xf32> to vector<64x32xf32>
    %93 = arith.addf %90, %92 : vector<64x32xf32>
    %94 = vector.shape_cast %93 : vector<64x32xf32> to vector<4x16x32xf32>
    %95 = vector.extract_strided_slice %94 {offsets = [0, 0, 0], sizes = [4, 8, 32], strides = [1, 1, 1]} : vector<4x16x32xf32> to vector<4x8x32xf32>
    %96 = vector.extract_strided_slice %94 {offsets = [0, 8, 0], sizes = [4, 8, 32], strides = [1, 1, 1]} : vector<4x16x32xf32> to vector<4x8x32xf32>
    %97 = arith.maximumf %95, %96 : vector<4x8x32xf32>
    %cst_48 = arith.constant 0.000000e+00 : f32
    %98 = vector.broadcast %cst_48 : f32 to vector<4x8x32xf32>
    %99 = arith.maximumf %97, %98 : vector<4x8x32xf32>
    %100 = vector.extract_strided_slice %99 {offsets = [0, 0, 0], sizes = [1, 8, 32], strides = [1, 1, 1]} : vector<4x8x32xf32> to vector<1x8x32xf32>
    %101 = vector.shape_cast %100 : vector<1x8x32xf32> to vector<8x32xf32>
    %102 = arith.truncf %101 : vector<8x32xf32> to vector<8x32xbf16>
    %c0_49 = arith.constant 0 : index
    %c0_50 = arith.constant 0 : index
    %c0_51 = arith.constant 0 : index
    %103 = vector.load %arg8[%c0_49, %c0_50, %c0_51] : memref<4x32x128xbf16, #tpu.memory_space<vmem>>, vector<1x32x128xbf16>
    %104 = vector.shape_cast %103 : vector<1x32x128xbf16> to vector<32x128xbf16>
    %cst_52 = arith.constant dense<0.000000e+00> : vector<8x128xf32>
    %105 = tpu.matmul %102, %104, %cst_52 {dimension_numbers = #tpu.dot_dimension_numbers<[1], [0], [0], [1], [0, 0, 1, 1], [], []>} : vector<8x32xbf16>, vector<32x128xbf16>, vector<8x128xf32> -> vector<8x128xf32>
    %106 = vector.extract_strided_slice %99 {offsets = [1, 0, 0], sizes = [1, 8, 32], strides = [1, 1, 1]} : vector<4x8x32xf32> to vector<1x8x32xf32>
    %107 = vector.shape_cast %106 : vector<1x8x32xf32> to vector<8x32xf32>
    %108 = arith.truncf %107 : vector<8x32xf32> to vector<8x32xbf16>
    %c1_53 = arith.constant 1 : index
    %c0_54 = arith.constant 0 : index
    %c0_55 = arith.constant 0 : index
    %109 = vector.load %arg8[%c1_53, %c0_54, %c0_55] : memref<4x32x128xbf16, #tpu.memory_space<vmem>>, vector<1x32x128xbf16>
    %110 = vector.shape_cast %109 : vector<1x32x128xbf16> to vector<32x128xbf16>
    %cst_56 = arith.constant dense<0.000000e+00> : vector<8x128xf32>
    %111 = tpu.matmul %108, %110, %cst_56 {dimension_numbers = #tpu.dot_dimension_numbers<[1], [0], [0], [1], [0, 0, 1, 1], [], []>} : vector<8x32xbf16>, vector<32x128xbf16>, vector<8x128xf32> -> vector<8x128xf32>
    %112 = arith.addf %105, %111 : vector<8x128xf32>
    %113 = vector.extract_strided_slice %99 {offsets = [2, 0, 0], sizes = [1, 8, 32], strides = [1, 1, 1]} : vector<4x8x32xf32> to vector<1x8x32xf32>
    %114 = vector.shape_cast %113 : vector<1x8x32xf32> to vector<8x32xf32>
    %115 = arith.truncf %114 : vector<8x32xf32> to vector<8x32xbf16>
    %c2_57 = arith.constant 2 : index
    %c0_58 = arith.constant 0 : index
    %c0_59 = arith.constant 0 : index
    %116 = vector.load %arg8[%c2_57, %c0_58, %c0_59] : memref<4x32x128xbf16, #tpu.memory_space<vmem>>, vector<1x32x128xbf16>
    %117 = vector.shape_cast %116 : vector<1x32x128xbf16> to vector<32x128xbf16>
    %cst_60 = arith.constant dense<0.000000e+00> : vector<8x128xf32>
    %118 = tpu.matmul %115, %117, %cst_60 {dimension_numbers = #tpu.dot_dimension_numbers<[1], [0], [0], [1], [0, 0, 1, 1], [], []>} : vector<8x32xbf16>, vector<32x128xbf16>, vector<8x128xf32> -> vector<8x128xf32>
    %119 = arith.addf %112, %118 : vector<8x128xf32>
    %120 = vector.extract_strided_slice %99 {offsets = [3, 0, 0], sizes = [1, 8, 32], strides = [1, 1, 1]} : vector<4x8x32xf32> to vector<1x8x32xf32>
    %121 = vector.shape_cast %120 : vector<1x8x32xf32> to vector<8x32xf32>
    %122 = arith.truncf %121 : vector<8x32xf32> to vector<8x32xbf16>
    %c3_61 = arith.constant 3 : index
    %c0_62 = arith.constant 0 : index
    %c0_63 = arith.constant 0 : index
    %123 = vector.load %arg8[%c3_61, %c0_62, %c0_63] : memref<4x32x128xbf16, #tpu.memory_space<vmem>>, vector<1x32x128xbf16>
    %124 = vector.shape_cast %123 : vector<1x32x128xbf16> to vector<32x128xbf16>
    %cst_64 = arith.constant dense<0.000000e+00> : vector<8x128xf32>
    %125 = tpu.matmul %122, %124, %cst_64 {dimension_numbers = #tpu.dot_dimension_numbers<[1], [0], [0], [1], [0, 0, 1, 1], [], []>} : vector<8x32xbf16>, vector<32x128xbf16>, vector<8x128xf32> -> vector<8x128xf32>
    %126 = arith.addf %119, %125 : vector<8x128xf32>
    %c0_65 = arith.constant 0 : index
    %c0_66 = arith.constant 0 : index
    %127 = vector.load %arg9[%c0_65, %c0_66] : memref<1x128xf32, #tpu.memory_space<vmem>>, vector<1x128xf32>
    %128 = vector.broadcast %127 : vector<1x128xf32> to vector<8x128xf32>
    %129 = arith.addf %126, %128 : vector<8x128xf32>
    %cst_67 = arith.constant 0.000000e+00 : f32
    %130 = vector.broadcast %cst_67 : f32 to vector<8x128xf32>
    %131 = arith.maximumf %129, %130 : vector<8x128xf32>
    %132 = arith.truncf %131 : vector<8x128xf32> to vector<8x128xbf16>
    %c0_68 = arith.constant 0 : index
    %c0_69 = arith.constant 0 : index
    %133 = vector.load %arg10[%c0_68, %c0_69] : memref<128x128xbf16, #tpu.memory_space<vmem>>, vector<128x128xbf16>
    %cst_70 = arith.constant dense<0.000000e+00> : vector<8x128xf32>
    %134 = tpu.matmul %132, %133, %cst_70 {dimension_numbers = #tpu.dot_dimension_numbers<[1], [0], [0], [1], [0, 0, 1, 1], [], []>} : vector<8x128xbf16>, vector<128x128xbf16>, vector<8x128xf32> -> vector<8x128xf32>
    %c0_71 = arith.constant 0 : index
    %c0_72 = arith.constant 0 : index
    %135 = vector.load %arg11[%c0_71, %c0_72] : memref<1x128xf32, #tpu.memory_space<vmem>>, vector<1x128xf32>
    %136 = vector.broadcast %135 : vector<1x128xf32> to vector<8x128xf32>
    %137 = arith.addf %134, %136 : vector<8x128xf32>
    %138 = arith.addf %137, %131 : vector<8x128xf32>
    %c0_73 = arith.constant 0 : index
    %c0_74 = arith.constant 0 : index
    %139 = vector.load %arg12[%c0_73, %c0_74] : memref<8x128xf32, #tpu.memory_space<vmem>>, vector<8x128xf32>
    tpu.vector_store %arg12[%c0_73, %c0_74], %138 {strides = array<i32>} : memref<8x128xf32, #tpu.memory_space<vmem>>, vector<8x128xf32>,
    return
  }
  func.func @transform_0(%arg0: i32) -> (i32, i32, i32) {
    %c0_i32 = arith.constant 0 : i32
    %c0_i32_0 = arith.constant 0 : i32
    %c0_i32_1 = arith.constant 0 : i32
    return %c0_i32, %arg0, %c0_i32_0 : i32, i32, i32
  }
  func.func @transform_1(%arg0: i32) -> (i32, i32) {
    %c0_i32 = arith.constant 0 : i32
    %c0_i32_0 = arith.constant 0 : i32
    %c0_i32_1 = arith.constant 0 : i32
    return %c0_i32, %c0_i32_0 : i32, i32
  }
  func.func @transform_2(%arg0: i32) -> (i32, i32) {
    %c0_i32 = arith.constant 0 : i32
    %c0_i32_0 = arith.constant 0 : i32
    %c0_i32_1 = arith.constant 0 : i32
    return %c0_i32, %c0_i32_0 : i32, i32
  }
  func.func @transform_3(%arg0: i32) -> (i32, i32, i32) {
    %c0_i32 = arith.constant 0 : i32
    %c0_i32_0 = arith.constant 0 : i32
    %c0_i32_1 = arith.constant 0 : i32
    %c0_i32_2 = arith.constant 0 : i32
    return %c0_i32, %c0_i32_0, %c0_i32_1 : i32, i32, i32
  }
  func.func @transform_4(%arg0: i32) -> (i32, i32) {
    %c0_i32 = arith.constant 0 : i32
    %c0_i32_0 = arith.constant 0 : i32
    %c0_i32_1 = arith.constant 0 : i32
    return %c0_i32, %c0_i32_0 : i32, i32
  }
  func.func @transform_5(%arg0: i32) -> (i32, i32, i32) {
    %c0_i32 = arith.constant 0 : i32
    %c0_i32_0 = arith.constant 0 : i32
    %c0_i32_1 = arith.constant 0 : i32
    %c0_i32_2 = arith.constant 0 : i32
    return %c0_i32, %c0_i32_0, %c0_i32_1 : i32, i32, i32
  }
  func.func @transform_6(%arg0: i32) -> (i32, i32) {
    %c0_i32 = arith.constant 0 : i32
    %c0_i32_0 = arith.constant 0 : i32
    %c0_i32_1 = arith.constant 0 : i32
    return %c0_i32, %c0_i32_0 : i32, i32
  }
  func.func @transform_7(%arg0: i32) -> (i32, i32, i32) {
    %c0_i32 = arith.constant 0 : i32
    %c0_i32_0 = arith.constant 0 : i32
    %c0_i32_1 = arith.constant 0 : i32
    %c0_i32_2 = arith.constant 0 : i32
    return %c0_i32, %c0_i32_0, %c0_i32_1 : i32, i32, i32
  }
  func.func @transform_8(%arg0: i32) -> (i32, i32) {
    %c0_i32 = arith.constant 0 : i32
    %c0_i32_0 = arith.constant 0 : i32
    %c0_i32_1 = arith.constant 0 : i32
    return %c0_i32, %c0_i32_0 : i32, i32
  }
  func.func @transform_9(%arg0: i32) -> (i32, i32) {
    %c0_i32 = arith.constant 0 : i32
    %c0_i32_0 = arith.constant 0 : i32
    %c0_i32_1 = arith.constant 0 : i32
    return %c0_i32, %c0_i32_0 : i32, i32
  }
  func.func @transform_10(%arg0: i32) -> (i32, i32) {
    %c0_i32 = arith.constant 0 : i32
    %c0_i32_0 = arith.constant 0 : i32
    %c0_i32_1 = arith.constant 0 : i32
    return %c0_i32, %c0_i32_0 : i32, i32
  }
  func.func @transform_11(%arg0: i32) -> (i32, i32) {
    %c0_i32 = arith.constant 0 : i32
    %c0_i32_0 = arith.constant 0 : i32
    return %arg0, %c0_i32 : i32, i32
  }
}

</mosaic_0001>

<bundles_post_ra>
// kernel: mf_cnn_forward.1
= control target key start
LH: loop header
LB: loop body
LE: loop exit
PB: predicated region body
PF: predicated region fallthrough
CT: control target
= control target key end

     0   :  { %s3886_s0 = inlined_call_operand.vmem [shape: f32[56,16,40], index: 0, kind: input, shape index: {}]   ;;  %s3887_s1 = inlined_call_operand.vmem [shape: bf16[40,64], index: 1, kind: input, shape index: {}]   ;;  %s3888_s2 = inlined_call_operand.vmem [shape: f32[1,64], index: 2, kind: input, shape index: {}]   ;;  %s3889_s3 = inlined_call_operand.vmem [shape: bf16[5,64,32], index: 3, kind: input, shape index: {}]   ;;  %s3890_s4 = inlined_call_operand.vmem [shape: f32[1,32], index: 4, kind: input, shape index: {}]   ;;  %s3891_s5 = inlined_call_operand.vmem [shape: bf16[5,32,32], index: 5, kind: input, shape index: {}]   ;;  %s3892_s6 = inlined_call_operand.vmem [shape: f32[1,32], index: 6, kind: input, shape index: {}]   ;;  %s3893_s7 = inlined_call_operand.vmem [shape: bf16[4,32,128], index: 7, kind: input, shape index: {}]   ;;  %s3894_s8 = inlined_call_operand.vmem [shape: f32[1,128], index: 8, kind: input, shape index: {}]   ;;  %s3895_s9 = inlined_call_operand.vmem [shape: bf16[128,128], index: 9, kind: input, shape index: {}]   ;;  %s3896_s10 = inlined_call_operand.vmem [shape: f32[1,128], index: 10, kind: input, shape index: {}]   ;;  %s3897_s11 = inlined_call_operand.hbm [shape: f32[16,128], index: 11, kind: output, shape index: {}]  }
   0x1   :  { %3898 = sst [smem:[#allocation6_spill]] %s3886_s0 }
   0x2   :  { %3899 = sst [smem:[#allocation7_spill]] %s3887_s1 }
   0x3   :  { %3900 = sst [smem:[#allocation8_spill]] %s3888_s2 }
   0x4   :  { %16 = vsyncpa [#allocation4], 0 }
   0x5   :  { %18 = vsyncpa [#allocation4 + $0x1], 0  ;;  %s3003_s17 = smov 0   ;;  %s3005_s18 = smov 0  }
   0x6   :  { %s3007_s19 = smov 0   ;;  %s3009_s20 = smov 0  }
   0x7 LB: > { %s2410_s21 = sadd.s32 4294967295, %s2941_s20   ;;  %s2411_s22 = sadd.s32 4294967294, %s2941_s20   ;;  %s2941_s20 = sphi %s3009_s20, %s3909_s20   ;;  %s2937_s19 = sphi %s3007_s19, %s3908_s19   ;;  %s2933_s18 = sphi %s3005_s18, %s3907_s18   ;;  %s2929_s17 = sphi %s3003_s17, %s3906_s17  }
   0x8   : > { %s3026_s23 = sadd.s32 1, %s2941_s20   ;;  %s31_s24 = sadd.s32 1, %s2937_s19 }
   0x9   : > { %s28_s25 = ssub.s32 %s2941_s20, %s3026_s23  ;;  %p38_p0 = scmp.ne.s32.totalorder %s2937_s19, %s2933_s18 }
   0xa   : > { %p29_p1 = scmp.eq.s32.totalorder %s28_s25, 0  ;;  %p39_p2 = scmp.eq.s32.totalorder %s2941_s20, 0 }
   0xb   : > { %p278_p3 = scmp.eq.s32.totalorder %s2410_s21, 1  ;;  %p283_p4 = scmp.ne.s32.totalorder %s2933_s18, %s2929_s17 }
   0xc   : > { %s3039_s26 = scalar_select %p29_p1, %s2937_s19, %s31_s24  }
   0xd   : > { %p40_p5 = por %p39_p2, %p38_p0  ;;  %p3041_p6 = por %p278_p3, %p38_p0 }
   0xe   : > { %p284_p7 = scmp.eq.s32.totalorder %s2411_s22, 1  ;;  %p2413_p9 = scmp.ge.s32.totalorder %s2941_s20, 2 }
  0x10   : > { %p3045_p8 = por %p284_p7, %p283_p4  ;;  %330 = sbr.rel (%p2413_p9) target bundleno = 87 (0x57), region = 56 }
  0x15   : > { %333 = sbr.rel (!%p40_p5) target bundleno = 87 (0x57), region = 60  ;;  %s335_s29 = sand.u32 (%p40_p5), 1, %s2937_s19  }
  0x16   : > { %s2414_s30 = sshll.u32 (%p40_p5), %s2941_s20, 3  ;;  %s2833_s12 = smul.u32 (%p40_p5), 448, %s335_s29 }
  0x17   : > { %s3903_s0 = sld [smem:[#allocation6_spill]] (%p40_p5) }
  0x18   : > { %s3062_s16 = scalar_lea.vmem (%p40_p5), [#allocation2], %s2833_s12 }
  0x1d   : > { %s3057_s15 = scalar_lea.vmem %s3903_s0, %s2414_s30 }
  0x1e   : > { %v478_v0 = vld [vmem:[%s3057_s15] sm:$0xff]  ;;  %v480_v1 = vld [vmem:[%s3057_s15 + $0x10] sm:$0xff] }
  0x1f   : > { %v482_v2 = vld [vmem:[%s3057_s15 + $0x20] sm:$0xff]  ;;  %479 = vst [vmem:[%s3062_s16] sm:$0xff] %v478_v0  ;;  %v484_v3 = vld [vmem:[%s3057_s15 + $0x30] sm:$0xff] }
  0x20   : > { %481 = vst [vmem:[%s3062_s16 + $0x8] sm:$0xff] %v480_v1  ;;  %v486_v4 = vld [vmem:[%s3057_s15 + $0x40] sm:$0xff]  ;;  %v488_v5 = vld [vmem:[%s3057_s15 + $0x50] sm:$0xff] }
  0x21   : > { %483 = vst [vmem:[%s3062_s16 + $0x10] sm:$0xff] %v482_v2  ;;  %v490_v6 = vld [vmem:[%s3057_s15 + $0x60] sm:$0xff]  ;;  %v492_v7 = vld [vmem:[%s3057_s15 + $0x70] sm:$0xff] }
  0x22   : > { %485 = vst [vmem:[%s3062_s16 + $0x18] sm:$0xff] %v484_v3  ;;  %v494_v8 = vld [vmem:[%s3057_s15 + $0x80] sm:$0xff]  ;;  %v496_v9 = vld [vmem:[%s3057_s15 + $0x90] sm:$0xff] }
  0x23   : > { %487 = vst [vmem:[%s3062_s16 + $0x20] sm:$0xff] %v486_v4  ;;  %v498_v10 = vld [vmem:[%s3057_s15 + $0xa0] sm:$0xff]  ;;  %v500_v11 = vld [vmem:[%s3057_s15 + $0xb0] sm:$0xff] }
  0x24   : > { %489 = vst [vmem:[%s3062_s16 + $0x28] sm:$0xff] %v488_v5  ;;  %v502_v12 = vld [vmem:[%s3057_s15 + $0xc0] sm:$0xff]  ;;  %v504_v13 = vld [vmem:[%s3057_s15 + $0xd0] sm:$0xff] }
  0x25   : > { %491 = vst [vmem:[%s3062_s16 + $0x30] sm:$0xff] %v490_v6  ;;  %v506_v14 = vld [vmem:[%s3057_s15 + $0xe0] sm:$0xff]  ;;  %v508_v15 = vld [vmem:[%s3057_s15 + $0xf0] sm:$0xff] }
  0x26   : > { %493 = vst [vmem:[%s3062_s16 + $0x38] sm:$0xff] %v492_v7  ;;  %v510_v16 = vld [vmem:[%s3057_s15 + $0x100] sm:$0xff]  ;;  %v512_v17 = vld [vmem:[%s3057_s15 + $0x110] sm:$0xff] }
  0x27   : > { %495 = vst [vmem:[%s3062_s16 + $0x40] sm:$0xff] %v494_v8  ;;  %v514_v18 = vld [vmem:[%s3057_s15 + $0x120] sm:$0xff]  ;;  %v516_v19 = vld [vmem:[%s3057_s15 + $0x130] sm:$0xff] }
  0x28   : > { %497 = vst [vmem:[%s3062_s16 + $0x48] sm:$0xff] %v496_v9  ;;  %v518_v20 = vld [vmem:[%s3057_s15 + $0x140] sm:$0xff]  ;;  %v520_v21 = vld [vmem:[%s3057_s15 + $0x150] sm:$0xff] }
  0x29   : > { %499 = vst [vmem:[%s3062_s16 + $0x50] sm:$0xff] %v498_v10  ;;  %v522_v22 = vld [vmem:[%s3057_s15 + $0x160] sm:$0xff]  ;;  %v524_v23 = vld [vmem:[%s3057_s15 + $0x170] sm:$0xff] }
  0x2a   : > { %501 = vst [vmem:[%s3062_s16 + $0x58] sm:$0xff] %v500_v11  ;;  %v526_v24 = vld [vmem:[%s3057_s15 + $0x180] sm:$0xff]  ;;  %v528_v25 = vld [vmem:[%s3057_s15 + $0x190] sm:$0xff] }
  0x2b   : > { %503 = vst [vmem:[%s3062_s16 + $0x60] sm:$0xff] %v502_v12  ;;  %v530_v26 = vld [vmem:[%s3057_s15 + $0x1a0] sm:$0xff]  ;;  %v532_v27 = vld [vmem:[%s3057_s15 + $0x1b0] sm:$0xff] }
  0x2c   : > { %505 = vst [vmem:[%s3062_s16 + $0x68] sm:$0xff] %v504_v13  ;;  %v534_v28 = vld [vmem:[%s3057_s15 + $0x1c0] sm:$0xff]  ;;  %v536_v29 = vld [vmem:[%s3057_s15 + $0x1d0] sm:$0xff] }
  0x2d   : > { %507 = vst [vmem:[%s3062_s16 + $0x70] sm:$0xff] %v506_v14  ;;  %v538_v30 = vld [vmem:[%s3057_s15 + $0x1e0] sm:$0xff]  ;;  %v540_v31 = vld [vmem:[%s3057_s15 + $0x1f0] sm:$0xff] }
  0x2e   : > { %509 = vst [vmem:[%s3062_s16 + $0x78] sm:$0xff] %v508_v15  ;;  %v542_v32 = vld [vmem:[%s3057_s15 + $0x200] sm:$0xff]  ;;  %v544_v33 = vld [vmem:[%s3057_s15 + $0x210] sm:$0xff] }
  0x2f   : > { %511 = vst [vmem:[%s3062_s16 + $0x80] sm:$0xff] %v510_v16  ;;  %v546_v34 = vld [vmem:[%s3057_s15 + $0x220] sm:$0xff]  ;;  %v548_v35 = vld [vmem:[%s3057_s15 + $0x230] sm:$0xff] }
  0x30   : > { %513 = vst [vmem:[%s3062_s16 + $0x88] sm:$0xff] %v512_v17  ;;  %v550_v36 = vld [vmem:[%s3057_s15 + $0x240] sm:$0xff]  ;;  %v552_v37 = vld [vmem:[%s3057_s15 + $0x250] sm:$0xff] }
  0x31   : > { %515 = vst [vmem:[%s3062_s16 + $0x90] sm:$0xff] %v514_v18  ;;  %v554_v38 = vld [vmem:[%s3057_s15 + $0x260] sm:$0xff]  ;;  %v556_v39 = vld [vmem:[%s3057_s15 + $0x270] sm:$0xff] }
  0x32   : > { %517 = vst [vmem:[%s3062_s16 + $0x98] sm:$0xff] %v516_v19  ;;  %v558_v40 = vld [vmem:[%s3057_s15 + $0x280] sm:$0xff]  ;;  %v560_v41 = vld [vmem:[%s3057_s15 + $0x290] sm:$0xff] }
  0x33   : > { %519 = vst [vmem:[%s3062_s16 + $0xa0] sm:$0xff] %v518_v20  ;;  %v562_v42 = vld [vmem:[%s3057_s15 + $0x2a0] sm:$0xff]  ;;  %v564_v43 = vld [vmem:[%s3057_s15 + $0x2b0] sm:$0xff] }
  0x34   : > { %521 = vst [vmem:[%s3062_s16 + $0xa8] sm:$0xff] %v520_v21  ;;  %v566_v44 = vld [vmem:[%s3057_s15 + $0x2c0] sm:$0xff]  ;;  %v568_v45 = vld [vmem:[%s3057_s15 + $0x2d0] sm:$0xff] }
  0x35   : > { %523 = vst [vmem:[%s3062_s16 + $0xb0] sm:$0xff] %v522_v22  ;;  %v570_v46 = vld [vmem:[%s3057_s15 + $0x2e0] sm:$0xff]  ;;  %v572_v47 = vld [vmem:[%s3057_s15 + $0x2f0] sm:$0xff] }
  0x36   : > { %525 = vst [vmem:[%s3062_s16 + $0xb8] sm:$0xff] %v524_v23  ;;  %v574_v48 = vld [vmem:[%s3057_s15 + $0x300] sm:$0xff]  ;;  %v576_v49 = vld [vmem:[%s3057_s15 + $0x310] sm:$0xff] }
  0x37   : > { %527 = vst [vmem:[%s3062_s16 + $0xc0] sm:$0xff] %v526_v24  ;;  %v578_v50 = vld [vmem:[%s3057_s15 + $0x320] sm:$0xff]  ;;  %v580_v51 = vld [vmem:[%s3057_s15 + $0x330] sm:$0xff] }
  0x38   : > { %529 = vst [vmem:[%s3062_s16 + $0xc8] sm:$0xff] %v528_v25  ;;  %v582_v52 = vld [vmem:[%s3057_s15 + $0x340] sm:$0xff]  ;;  %v584_v53 = vld [vmem:[%s3057_s15 + $0x350] sm:$0xff] }
  0x39   : > { %531 = vst [vmem:[%s3062_s16 + $0xd0] sm:$0xff] %v530_v26  ;;  %v586_v54 = vld [vmem:[%s3057_s15 + $0x360] sm:$0xff]  ;;  %v588_v55 = vld [vmem:[%s3057_s15 + $0x370] sm:$0xff] }
  0x3a   : > { %533 = vst [vmem:[%s3062_s16 + $0xd8] sm:$0xff] %v532_v27 }
  0x3b   : > { %535 = vst [vmem:[%s3062_s16 + $0xe0] sm:$0xff] %v534_v28 }
  0x3c   : > { %537 = vst [vmem:[%s3062_s16 + $0xe8] sm:$0xff] %v536_v29 }
  0x3d   : > { %539 = vst [vmem:[%s3062_s16 + $0xf0] sm:$0xff] %v538_v30 }
  0x3e   : > { %541 = vst [vmem:[%s3062_s16 + $0xf8] sm:$0xff] %v540_v31 }
  0x3f   : > { %543 = vst [vmem:[%s3062_s16 + $0x100] sm:$0xff] %v542_v32 }
  0x40   : > { %545 = vst [vmem:[%s3062_s16 + $0x108] sm:$0xff] %v544_v33 }
  0x41   : > { %547 = vst [vmem:[%s3062_s16 + $0x110] sm:$0xff] %v546_v34 }
  0x42   : > { %549 = vst [vmem:[%s3062_s16 + $0x118] sm:$0xff] %v548_v35 }
  0x43   : > { %551 = vst [vmem:[%s3062_s16 + $0x120] sm:$0xff] %v550_v36 }
  0x44   : > { %553 = vst [vmem:[%s3062_s16 + $0x128] sm:$0xff] %v552_v37 }
  0x45   : > { %555 = vst [vmem:[%s3062_s16 + $0x130] sm:$0xff] %v554_v38 }
  0x46   : > { %557 = vst [vmem:[%s3062_s16 + $0x138] sm:$0xff] %v556_v39 }
  0x47   : > { %559 = vst [vmem:[%s3062_s16 + $0x140] sm:$0xff] %v558_v40 }
  0x48   : > { %561 = vst [vmem:[%s3062_s16 + $0x148] sm:$0xff] %v560_v41 }
  0x49   : > { %563 = vst [vmem:[%s3062_s16 + $0x150] sm:$0xff] %v562_v42 }
  0x4a   : > { %565 = vst [vmem:[%s3062_s16 + $0x158] sm:$0xff] %v564_v43 }
  0x4b   : > { %567 = vst [vmem:[%s3062_s16 + $0x160] sm:$0xff] %v566_v44 }
  0x4c   : > { %569 = vst [vmem:[%s3062_s16 + $0x168] sm:$0xff] %v568_v45 }
  0x4d   : > { %571 = vst [vmem:[%s3062_s16 + $0x170] sm:$0xff] %v570_v46 }
  0x4e   : > { %573 = vst [vmem:[%s3062_s16 + $0x178] sm:$0xff] %v572_v47 }
  0x4f   : > { %575 = vst [vmem:[%s3062_s16 + $0x180] sm:$0xff] %v574_v48 }
  0x50   : > { %577 = vst [vmem:[%s3062_s16 + $0x188] sm:$0xff] %v576_v49 }
  0x51   : > { %579 = vst [vmem:[%s3062_s16 + $0x190] sm:$0xff] %v578_v50 }
  0x52   : > { %581 = vst [vmem:[%s3062_s16 + $0x198] sm:$0xff] %v580_v51 }
  0x53   : > { %583 = vst [vmem:[%s3062_s16 + $0x1a0] sm:$0xff] %v582_v52 }
  0x54   : > { %585 = vst [vmem:[%s3062_s16 + $0x1a8] sm:$0xff] %v584_v53 }
  0x55   : > { %587 = vst [vmem:[%s3062_s16 + $0x1b0] sm:$0xff] %v586_v54 }
  0x56   : > { %589 = vst [vmem:[%s3062_s16 + $0x1b8] sm:$0xff] %v588_v55 }
  0x57 PF: > { %p2415_p10 = scmp.ge.s32.totalorder %s2941_s20, 1  ;;  %p594_p11 = scmp.lt.s32.totalorder %s2941_s20, 3 }
  0x59   : > { %p595_p12 = pnand %p2415_p10, %p594_p11 }
  0x5a   : > { %s3904_s1 = sld [smem:[#allocation7_spill]] (!%p595_p12)  ;;  %s3179_s25 = sand.u32 (!%p595_p12), 1, %s2933_s18  }
  0x5b   : > { %598 = sbr.rel (%p595_p12) target bundleno = 1501 (0x5dd), region = 98  ;;  %s3905_s2 = sld [smem:[#allocation8_spill]] (!%p595_p12) }
  0x5c   : > { %s2834_s29 = smul.u32 (!%p595_p12), 448, %s3179_s25  ;;  %s2416_s12 = sshll.u32 (!%p595_p12), %s3179_s25, 3 }
  0x5d   : > { %s2782_s13 = sshll.u32 (!%p595_p12), %s2410_s21, 3 }
  0x5e   : > { %s3188_s15 = scalar_lea.vmem (!%p595_p12), [#allocation2], %s2834_s29  ;;  %s639_s29 = scalar_lea.vmem (!%p595_p12), [#allocation3], %s2416_s12 }
  0x5f   : > { %s2343_s30 = sshll.u32 (!%p595_p12), %s639_s29, 4  ;;  %s2344_s30 = int_to_ptr.vmem [resolvable:$true] %s2343_s30 }
  0x60   : > { %v729_v56 = vld [vmem:[%s3904_s1 + $0x10] sm:$0xf]  ;;  %vm834_vm0 = vcmask 1043456   ;;  %v2786_v60 = vld [vmem:[%s3904_s1 + $0x8] sm:$0xff]  ;;  %v2785_v61 = vld [vmem:[%s3904_s1] sm:$0xff]  ;;  %vm749_vm1 = vcmask 326656  }
  0x61   : > { %v743_v57 = vunpack.c.l.b16 %v729_v56  ;;  %v641_v62 = vld [vmem:[%s3188_s15] sm:$0xff]  ;;  %v642_v63 = vld [vmem:[%s3188_s15 + $0x8] sm:$0xff]  ;;  %v643_v1 = vld [vmem:[%s3188_s15 + $0x10] sm:$0xff]  ;;  %vm1108_vm2 = vcmask 523264   ;;  %vm1814_vm3 = vcmask 261120   ;;  %s2331_s1 = scalar_lea.sflag [#allocation4], %s3179_s25 }
  0x62   : > { %v697_v0 = vpack.c.bf16 %v642_v63, %v641_v62  ;;  %v644_v2 = vld [vmem:[%s3188_s15 + $0x18] sm:$0xff]  ;;  %v645_v4 = vld [vmem:[%s3188_s15 + $0x20] sm:$0xff]  ;;  %v646_v5 = vld [vmem:[%s3188_s15 + $0x28] sm:$0xff] }
  0x63   : > { %v746_v58 = vpack.c.b16 %v743_v57, %v743_v57  ;;  %v698_v3 = vpack.c.bf16 %v644_v2, %v643_v1  ;;  %v699_v6 = vpack.c.bf16 %v646_v5, %v645_v4  ;;  %v647_v7 = vld [vmem:[%s3188_s15 + $0x30] sm:$0xff]  ;;  %v648_v8 = vld [vmem:[%s3188_s15 + $0x38] sm:$0xff]  ;;  %v649_v10 = vld [vmem:[%s3188_s15 + $0x40] sm:$0xff] }
  0x64   : > { %v700_v9 = vpack.c.bf16 %v648_v8, %v647_v7  ;;  %v650_v11 = vld [vmem:[%s3188_s15 + $0x48] sm:$0xff]  ;;  %v651_v13 = vld [vmem:[%s3188_s15 + $0x50] sm:$0xff]  ;;  %v652_v14 = vld [vmem:[%s3188_s15 + $0x58] sm:$0xff] }
  0x65   : > { %v836_v59 = vsel %vm834_vm0, %v746_v58, 0  ;;  %v701_v12 = vpack.c.bf16 %v650_v11, %v649_v10  ;;  %v702_v15 = vpack.c.bf16 %v652_v14, %v651_v13  ;;  %v653_v16 = vld [vmem:[%s3188_s15 + $0x60] sm:$0xff]  ;;  %v654_v17 = vld [vmem:[%s3188_s15 + $0x68] sm:$0xff]  ;;  %v655_v19 = vld [vmem:[%s3188_s15 + $0x70] sm:$0xff] }
  0x66   : > { %843 = vmatpush.bf16.msra.mxu0 %v836_v59  ;;  %v703_v18 = vpack.c.bf16 %v654_v17, %v653_v16  ;;  %v656_v20 = vld [vmem:[%s3188_s15 + $0x78] sm:$0xff]  ;;  %v2789_v23 = vld [vmem:[%s3889_s3 + $0x10] sm:$0xff]  ;;  %v2788_v24 = vld [vmem:[%s3889_s3 + $0x8] sm:$0xff] }
  0x67   : > { %v704_v21 = vpack.c.bf16 %v656_v20, %v655_v19  ;;  %v2790_v22 = vld [vmem:[%s3889_s3 + $0x18] sm:$0xff]  ;;  %v657_v25 = vld [vmem:[%s3188_s15 + $0x80] sm:$0xff]  ;;  %v658_v26 = vld [vmem:[%s3188_s15 + $0x88] sm:$0xff] }
  0x68   : > { %1278 = vmatpush.bf16.msra.mxu2 %v2790_v22  ;;  %v2787_v27 = vld [vmem:[%s3889_s3] sm:$0xff]  ;;  %v705_v28 = vpack.c.bf16 %v658_v26, %v657_v25  ;;  %v2794_v30 = vld [vmem:[%s3889_s3 + $0x38] sm:$0xff]  ;;  %v2793_v31 = vld [vmem:[%s3889_s3 + $0x30] sm:$0xff] }
  0x69   : > { %1149 = vmatpush.bf16.msra.mxu1 %v2794_v30  ;;  %v2792_v33 = vld [vmem:[%s3889_s3 + $0x28] sm:$0xff]  ;;  %v659_v34 = vld [vmem:[%s3188_s15 + $0x90] sm:$0xff]  ;;  %v660_v35 = vld [vmem:[%s3188_s15 + $0x98] sm:$0xff] }
  0x6a   : > { %844 = vmatpush.bf16.msra.mxu0 %v2786_v60  ;;  %v2791_v36 = vld [vmem:[%s3889_s3 + $0x20] sm:$0xff]  ;;  %v706_v37 = vpack.c.bf16 %v660_v35, %v659_v34  ;;  %v2798_v39 = vld [vmem:[%s3889_s3 + $0x58] sm:$0xff]  ;;  %v2797_v41 = vld [vmem:[%s3889_s3 + $0x50] sm:$0xff] }
  0x6b   : > { %1384 = vmatpush.bf16.msra.mxu3 %v2798_v39  ;;  %v3249_v40 = vld [vmem:[%s3905_s2] ss:$0 sm:$0xff]  ;;  %v2796_v45 = vld [vmem:[%s3889_s3 + $0x48] sm:$0xff]  ;;  %v663_v62 = vld [vmem:[%s3188_s15 + $0xb0] sm:$0xff] }
  0x6c   : > { %1279 = vmatpush.bf16.msra.mxu2 %v2789_v23  ;;  %v661_v50 = vld [vmem:[%s3188_s15 + $0xa0] sm:$0xff]  ;;  %v662_v51 = vld [vmem:[%s3188_s15 + $0xa8] sm:$0xff]  ;;  %v664_v63 = vld [vmem:[%s3188_s15 + $0xb8] sm:$0xff] }
  0x6d   : > { %1150 = vmatpush.bf16.msra.mxu1 %v2793_v31  ;;  %v2795_v52 = vld [vmem:[%s3889_s3 + $0x40] sm:$0xff]  ;;  %v707_v56 = vpack.c.bf16 %v662_v51, %v661_v50  ;;  %v708_v2 = vpack.c.bf16 %v664_v63, %v663_v62  ;;  %v668_v19 = vld [vmem:[%s3188_s15 + $0xd8] sm:$0xff]  ;;  %v674_v50 = vld [vmem:[%s3188_s15 + $0x108] sm:$0xff] }
  0x6e   : > { %845 = vmatpush.bf16.msra.mxu0 %v2785_v61  ;;  %v665_v8 = vld [vmem:[%s3188_s15 + $0xc0] sm:$0xff]  ;;  %v672_v39 = vld [vmem:[%s3188_s15 + $0xf8] sm:$0xff] }
  0x6f   : > { %1385 = vmatpush.bf16.msra.mxu3 %v2797_v41 }
  0x70   : > { %1280 = vmatpush.bf16.msra.mxu2 %v2788_v24 }
  0x71   : > { %2425 = vmatmul.msk.bf16.vlgmr.msra.gmra.mxu0 %vm749_vm1, %v697_v0  ;;  %1151 = vmatpush.bf16.msra.mxu1 %v2792_v33 }
  0x73   : > { %1386 = vmatpush.bf16.msra.mxu3 %v2796_v45 }
  0x74   : > { %1281 = vmatpush.bf16.msra.mxu2 %v2787_v27 }
  0x75   : > { %1152 = vmatpush.bf16.msra.mxu1 %v2791_v36 }
  0x77   : > { %1387 = vmatpush.bf16.msra.mxu3 %v2795_v52 }
  0x81   : > { %2426 = vmatmul.msk.bf16.gmra.mxu0 %vm749_vm1, %v698_v3 }
  0x91   : > { %2427 = vmatmul.msk.bf16.gmra.mxu0 %vm749_vm1, %v699_v6 }
  0xa1   : > { %2428 = vmatmul.msk.bf16.gmra.mxu0 %vm749_vm1, %v700_v9  ;;  %v666_v9 = vld [vmem:[%s3188_s15 + $0xc8] sm:$0xff] }
  0xb1   : > { %2429 = vmatmul.msk.bf16.gmra.mxu0 %vm749_vm1, %v701_v12  ;;  %v709_v12 = vpack.c.bf16 %v666_v9, %v665_v8 }
  0xc1   : > { %2430 = vmatmul.msk.bf16.gmra.mxu0 %vm749_vm1, %v702_v15 }
  0xd1   : > { %2431 = vmatmul.msk.bf16.gmra.mxu0 %vm749_vm1, %v703_v18  ;;  %v667_v18 = vld [vmem:[%s3188_s15 + $0xd0] sm:$0xff] }
  0xd2   : > { %v710_v22 = vpack.c.bf16 %v668_v19, %v667_v18 }
  0xe1   : > { %2432 = vmatmul.msk.bf16.gmra.mxu0 %vm749_vm1, %v704_v21 }
  0xee   : > { %v847_v29 = vpop.f32.mrf.mxu0 }
  0xef   : > { %v848_v43 = vadd.f32 %v3249_v40, %v847_v29  ;;  %v670_v29 = vld [vmem:[%s3188_s15 + $0xe8] sm:$0xff] }
  0xf1   : > { %2433 = vmatmul.msk.bf16.gmra.mxu0 %vm749_vm1, %v705_v28  ;;  %v669_v28 = vld [vmem:[%s3188_s15 + $0xe0] sm:$0xff] }
  0xf6   : > { %v849_v32 = vpop.f32.mrf.mxu0 }
  0xf7   : > { %v850_v42 = vadd.f32 %v3249_v40, %v849_v32  ;;  %v711_v32 = vpack.c.bf16 %v670_v29, %v669_v28  ;;  %v681_v29 = vld [vmem:[%s3188_s15 + $0x140] sm:$0xff] }
  0xf9   : > { %v987_v46 = vmax.f32 %v848_v43, %v850_v42 }
  0xfb   : > { %v1015_v53 = vmax.f32 %v987_v46, 0.0 }
  0xfe   : > { %v852_v38 = vpop.f32.mrf.mxu0 }
  0xff   : > { %v853_v47 = vadd.f32 %v3249_v40, %v852_v38  ;;  %v671_v38 = vld [vmem:[%s3188_s15 + $0xf0] sm:$0xff] }
 0x100   : > { %v712_v43 = vpack.c.bf16 %v672_v39, %v671_v38 }
 0x101   : > { %2434 = vmatmul.msk.bf16.gmra.mxu0 %vm749_vm1, %v706_v37 }
 0x106   : > { %v854_v44 = vpop.f32.mrf.mxu0 }
 0x107   : > { %v855_v48 = vadd.f32 %v3249_v40, %v854_v44 }
 0x109   : > { %v988_v49 = vmax.f32 %v853_v47, %v855_v48 }
 0x10b   : > { %v1016_v54 = vmax.f32 %v988_v49, 0.0  ;;  %v673_v49 = vld [vmem:[%s3188_s15 + $0x100] sm:$0xff] }
 0x10d   : > { %v1043_v55 = vpack.c.bf16 %v1016_v54, %v1015_v53  ;;  %v713_v53 = vpack.c.bf16 %v674_v50, %v673_v49  ;;  %v684_v49 = vld [vmem:[%s3188_s15 + $0x158] sm:$0xff] }
 0x10e   : > { %v857_v57 = vpop.f32.mrf.mxu0 }
 0x10f   : > { %2505 = vmatmul.msk.bf16.vlgmr.msra.gmra.mxu2 %vm1108_vm2, %v1043_v55  ;;  %v858_v59 = vadd.f32 %v3249_v40, %v857_v57 }
 0x111   : > { %2435 = vmatmul.msk.bf16.gmra.mxu0 %vm749_vm1, %v707_v56 }
 0x116   : > { %v859_v58 = vpop.f32.mrf.mxu0 }
 0x117   : > { %v860_v60 = vadd.f32 %v3249_v40, %v859_v58 }
 0x119   : > { %v989_v61 = vmax.f32 %v858_v59, %v860_v60  ;;  %v675_v59 = vld [vmem:[%s3188_s15 + $0x110] sm:$0xff]  ;;  %v676_v60 = vld [vmem:[%s3188_s15 + $0x118] sm:$0xff] }
 0x11a   : > { %v714_v63 = vpack.c.bf16 %v676_v60, %v675_v59 }
 0x11b   : > { %v1017_v0 = vmax.f32 %v989_v61, 0.0 }
 0x11d   : > { %v1063_v1 = vpack.c.bf16 %v1017_v0, %v1016_v54 }
 0x11e   : > { %v862_v3 = vpop.f32.mrf.mxu0 }
 0x11f   : > { %2477 = vmatmul.msk.bf16.vlgmr.msra.gmra.mxu1 %vm1108_vm2, %v1063_v1  ;;  %v863_v5 = vadd.f32 %v3249_v40, %v862_v3 }
 0x121   : > { %2436 = vmatmul.msk.bf16.gmra.mxu0 %vm749_vm1, %v708_v2 }
 0x126   : > { %v864_v4 = vpop.f32.mrf.mxu0 }
 0x127   : > { %v865_v6 = vadd.f32 %v3249_v40, %v864_v4 }
 0x129   : > { %v990_v7 = vmax.f32 %v863_v5, %v865_v6  ;;  %v677_v5 = vld [vmem:[%s3188_s15 + $0x120] sm:$0xff]  ;;  %v678_v6 = vld [vmem:[%s3188_s15 + $0x128] sm:$0xff] }
 0x12a   : > { %v715_v9 = vpack.c.bf16 %v678_v6, %v677_v5 }
 0x12b   : > { %v1018_v10 = vmax.f32 %v990_v7, 0.0 }
 0x12d   : > { %v1044_v11 = vpack.c.bf16 %v1018_v10, %v1017_v0 }
 0x12e   : > { %v867_v13 = vpop.f32.mrf.mxu0 }
 0x12f   : > { %2506 = vmatmul.msk.bf16.gmra.mxu2 %vm1108_vm2, %v1044_v11  ;;  %2541 = vmatmul.msk.bf16.vlgmr.msra.gmra.mxu3 %vm1108_vm2, %v1044_v11  ;;  %v868_v15 = vadd.f32 %v3249_v40, %v867_v13 }
 0x131   : > { %2437 = vmatmul.msk.bf16.gmra.mxu0 %vm749_vm1, %v709_v12 }
 0x136   : > { %v869_v14 = vpop.f32.mrf.mxu0 }
 0x137   : > { %v870_v16 = vadd.f32 %v3249_v40, %v869_v14 }
 0x139   : > { %v991_v17 = vmax.f32 %v868_v15, %v870_v16  ;;  %v679_v15 = vld [vmem:[%s3188_s15 + $0x130] sm:$0xff]  ;;  %v680_v16 = vld [vmem:[%s3188_s15 + $0x138] sm:$0xff] }
 0x13b   : > { %v1019_v20 = vmax.f32 %v991_v17, 0.0 }
 0x13d   : > { %v3286_v21 = vpack.c.bf16 %v1019_v20, %v1018_v10 }
 0x13e   : > { %v872_v23 = vpop.f32.mrf.mxu0 }
 0x13f   : > { %2478 = vmatmul.msk.bf16.gmra.mxu1 %vm1108_vm2, %v3286_v21  ;;  %v873_v25 = vadd.f32 %v3249_v40, %v872_v23  ;;  %v716_v23 = vpack.c.bf16 %v680_v16, %v679_v15  ;;  %v2805_v15 = vld [vmem:[%s3889_s3 + $0x90] sm:$0xff] }
 0x141   : > { %2438 = vmatmul.msk.bf16.gmra.mxu0 %vm749_vm1, %v710_v22 }
 0x146   : > { %v874_v24 = vpop.f32.mrf.mxu0 }
 0x147   : > { %v875_v26 = vadd.f32 %v3249_v40, %v874_v24 }
 0x149   : > { %v992_v27 = vmax.f32 %v873_v25, %v875_v26 }
 0x14b   : > { %v1020_v30 = vmax.f32 %v992_v27, 0.0 }
 0x14d   : > { %v3295_v31 = vpack.c.bf16 %v1020_v30, %v1019_v20 }
 0x14e   : > { %v877_v33 = vpop.f32.mrf.mxu0 }
 0x14f   : > { %2507 = vmatmul.msk.bf16.gmra.mxu2 %vm1108_vm2, %v3295_v31  ;;  %2542 = vmatmul.msk.bf16.gmra.mxu3 %vm1108_vm2, %v3295_v31  ;;  %v878_v35 = vadd.f32 %v3249_v40, %v877_v33  ;;  %v2806_v33 = vld [vmem:[%s3889_s3 + $0x98] sm:$0xff] }
 0x150   : > { %1644 = vmatpush.bf16.msrb.mxu2 %v2806_v33 }
 0x151   : > { %2439 = vmatmul.msk.bf16.gmra.mxu0 %vm749_vm1, %v711_v32 }
 0x154   : > { %1645 = vmatpush.bf16.msrb.mxu2 %v2805_v15 }
 0x156   : > { %v879_v34 = vpop.f32.mrf.mxu0 }
 0x157   : > { %v880_v36 = vadd.f32 %v3249_v40, %v879_v34 }
 0x159   : > { %v993_v37 = vmax.f32 %v878_v35, %v880_v36 }
 0x15b   : > { %v1021_v41 = vmax.f32 %v993_v37, 0.0  ;;  %v2802_v37 = vld [vmem:[%s3889_s3 + $0x78] sm:$0xff] }
 0x15c   : > { %1514 = vmatpush.bf16.msrb.mxu1 %v2802_v37 }
 0x15d   : > { %v3306_v42 = vpack.c.bf16 %v1021_v41, %v1020_v30  ;;  %v682_v30 = vld [vmem:[%s3188_s15 + $0x148] sm:$0xff] }
 0x15e   : > { %v882_v44 = vpop.f32.mrf.mxu0  ;;  %v717_v35 = vpack.c.bf16 %v682_v30, %v681_v29  ;;  %v689_v29 = vld [vmem:[%s3188_s15 + $0x180] sm:$0xff]  ;;  %v690_v30 = vld [vmem:[%s3188_s15 + $0x188] sm:$0xff] }
 0x15f   : > { %2479 = vmatmul.msk.bf16.gmra.mxu1 %vm1108_vm2, %v3306_v42  ;;  %v883_v46 = vadd.f32 %v3249_v40, %v882_v44 }
 0x161   : > { %2440 = vmatmul.msk.bf16.gmra.mxu0 %vm749_vm1, %v712_v43 }
 0x166   : > { %v884_v45 = vpop.f32.mrf.mxu0 }
 0x167   : > { %v885_v47 = vadd.f32 %v3249_v40, %v884_v45 }
 0x169   : > { %v994_v48 = vmax.f32 %v883_v46, %v885_v47 }
 0x16b   : > { %v1022_v51 = vmax.f32 %v994_v48, 0.0  ;;  %v683_v48 = vld [vmem:[%s3188_s15 + $0x150] sm:$0xff] }
 0x16d   : > { %v3315_v52 = vpack.c.bf16 %v1022_v51, %v1021_v41 }
 0x16e   : > { %v887_v54 = vpop.f32.mrf.mxu0 }
 0x16f   : > { %2508 = vmatmul.msk.bf16.gmra.mxu2 %vm1108_vm2, %v3315_v52  ;;  %2543 = vmatmul.msk.bf16.gmra.mxu3 %vm1108_vm2, %v3315_v52  ;;  %v888_v56 = vadd.f32 %v3249_v40, %v887_v54 }
 0x171   : > { %2441 = vmatmul.msk.bf16.gmra.mxu0 %vm749_vm1, %v713_v53 }
 0x176   : > { %v889_v55 = vpop.f32.mrf.mxu0 }
 0x177   : > { %v890_v57 = vadd.f32 %v3249_v40, %v889_v55 }
 0x179   : > { %v995_v58 = vmax.f32 %v888_v56, %v890_v57  ;;  %v718_v56 = vpack.c.bf16 %v684_v49, %v683_v48  ;;  %v691_v48 = vld [vmem:[%s3188_s15 + $0x190] sm:$0xff]  ;;  %v692_v49 = vld [vmem:[%s3188_s15 + $0x198] sm:$0xff] }
 0x17b   : > { %v1023_v61 = vmax.f32 %v995_v58, 0.0 }
 0x17d   : > { %v3326_v62 = vpack.c.bf16 %v1023_v61, %v1022_v51 }
 0x17e   : > { %v892_v0 = vpop.f32.mrf.mxu0 }
 0x17f   : > { %2480 = vmatmul.msk.bf16.gmra.mxu1 %vm1108_vm2, %v3326_v62  ;;  %v893_v2 = vadd.f32 %v3249_v40, %v892_v0  ;;  %v686_v0 = vld [vmem:[%s3188_s15 + $0x168] sm:$0xff] }
 0x181   : > { %2442 = vmatmul.msk.bf16.gmra.mxu0 %vm749_vm1, %v714_v63  ;;  %v685_v63 = vld [vmem:[%s3188_s15 + $0x160] sm:$0xff] }
 0x186   : > { %v894_v1 = vpop.f32.mrf.mxu0 }
 0x187   : > { %v895_v3 = vadd.f32 %v3249_v40, %v894_v1 }
 0x189   : > { %v996_v4 = vmax.f32 %v893_v2, %v895_v3  ;;  %v719_v3 = vpack.c.bf16 %v686_v0, %v685_v63 }
 0x18b   : > { %v1024_v7 = vmax.f32 %v996_v4, 0.0 }
 0x18d   : > { %v3335_v8 = vpack.c.bf16 %v1024_v7, %v1023_v61 }
 0x18e   : > { %v897_v10 = vpop.f32.mrf.mxu0 }
 0x18f   : > { %2509 = vmatmul.msk.bf16.gmra.mxu2 %vm1108_vm2, %v3335_v8  ;;  %2544 = vmatmul.msk.bf16.gmra.mxu3 %vm1108_vm2, %v3335_v8  ;;  %v898_v12 = vadd.f32 %v3249_v40, %v897_v10 }
 0x191   : > { %2443 = vmatmul.msk.bf16.gmra.mxu0 %vm749_vm1, %v715_v9 }
 0x192   : > { %v1283_v18 = vpop.f32.mrf.mxu2 }
 0x196   : > { %v899_v11 = vpop.f32.mrf.mxu0 }
 0x197   : > { %v900_v13 = vadd.f32 %v3249_v40, %v899_v11 }
 0x199   : > { %v997_v14 = vmax.f32 %v898_v12, %v900_v13  ;;  %v687_v12 = vld [vmem:[%s3188_s15 + $0x170] sm:$0xff]  ;;  %v688_v13 = vld [vmem:[%s3188_s15 + $0x178] sm:$0xff] }
 0x19a   : > { %v3370_v41 = vpop.f32.mrf.mxu2 }
 0x19b   : > { %v1025_v17 = vmax.f32 %v997_v14, 0.0 }
 0x19c   : > { %v1154_v19 = vpop.f32.mrf.mxu1 }
 0x19d   : > { %v1284_v20 = vadd.f32 %v1283_v18, %v1154_v19  ;;  %v3346_v22 = vpack.c.bf16 %v1025_v17, %v1024_v7 }
 0x19e   : > { %v902_v24 = vpop.f32.mrf.mxu0 }
 0x19f   : > { %2481 = vmatmul.msk.bf16.gmra.mxu1 %vm1108_vm2, %v3346_v22  ;;  %v903_v26 = vadd.f32 %v3249_v40, %v902_v24  ;;  %v2801_v24 = vld [vmem:[%s3889_s3 + $0x70] sm:$0xff] }
 0x1a0   : > { %1515 = vmatpush.bf16.msrb.mxu1 %v2801_v24 }
 0x1a1   : > { %2444 = vmatmul.msk.bf16.gmra.mxu0 %vm749_vm1, %v716_v23 }
 0x1a4   : > { %v3372_v43 = vpop.f32.mrf.mxu1 }
 0x1a6   : > { %v904_v25 = vpop.f32.mrf.mxu0 }
 0x1a7   : > { %v905_v27 = vadd.f32 %v3249_v40, %v904_v25 }
 0x1a9   : > { %v998_v28 = vmax.f32 %v903_v26, %v905_v27 }
 0x1ab   : > { %v1026_v32 = vmax.f32 %v998_v28, 0.0 }
 0x1ad   : > { %v3358_v34 = vpack.c.bf16 %v1026_v32, %v1025_v17 }
 0x1ae   : > { %v907_v36 = vpop.f32.mrf.mxu0 }
 0x1af   : > { %2510 = vmatmul.msk.bf16.gmra.mxu2 %vm1108_vm2, %v3358_v34  ;;  %2545 = vmatmul.msk.bf16.gmra.mxu3 %vm1108_vm2, %v3358_v34  ;;  %v908_v45 = vadd.f32 %v3249_v40, %v907_v36 }
 0x1b1   : > { %2445 = vmatmul.msk.bf16.gmra.mxu0 %vm749_vm1, %v717_v35  ;;  %v721_v35 = vpack.c.bf16 %v690_v30, %v689_v29 }
 0x1b2   : > { %v1389_v38 = vpop.f32.mrf.mxu3  ;;  %v1288_v51 = vpop.f32.mrf.mxu2 }
 0x1b3   : > { %v3368_v39 = vadd.f32 %v1389_v38, %v1284_v20  ;;  %v720_v20 = vpack.c.bf16 %v688_v13, %v687_v12 }
 0x1b6   : > { %v909_v44 = vpop.f32.mrf.mxu0 }
 0x1b7   : > { %v910_v46 = vadd.f32 %v3249_v40, %v909_v44 }
 0x1b9   : > { %v999_v47 = vmax.f32 %v908_v45, %v910_v46 }
 0x1ba   : > { %v3396_v5 = vpop.f32.mrf.mxu2 }
 0x1bb   : > { %v1027_v50 = vmax.f32 %v999_v47, 0.0 }
 0x1bc   : > { %v1159_v53 = vpop.f32.mrf.mxu1 }
 0x1bd   : > { %v3378_v54 = vadd.f32 %v1288_v51, %v1159_v53  ;;  %v3380_v55 = vpack.c.bf16 %v1027_v50, %v1026_v32 }
 0x1be   : > { %v912_v57 = vpop.f32.mrf.mxu0 }
 0x1bf   : > { %2482 = vmatmul.msk.bf16.gmra.mxu1 %vm1108_vm2, %v3380_v55  ;;  %v913_v59 = vadd.f32 %v3249_v40, %v912_v57 }
 0x1c1   : > { %2446 = vmatmul.msk.bf16.gmra.mxu0 %vm749_vm1, %v718_v56 }
 0x1c4   : > { %v3398_v6 = vpop.f32.mrf.mxu1 }
 0x1c6   : > { %v914_v58 = vpop.f32.mrf.mxu0 }
 0x1c7   : > { %v915_v60 = vadd.f32 %v3249_v40, %v914_v58  ;;  %v722_v58 = vpack.c.bf16 %v692_v49, %v691_v48 }
 0x1c9   : > { %v1000_v61 = vmax.f32 %v913_v59, %v915_v60 }
 0x1cb   : > { %v1028_v1 = vmax.f32 %v1000_v61, 0.0 }
 0x1cd   : > { %v3389_v2 = vpack.c.bf16 %v1028_v1, %v1027_v50 }
 0x1ce   : > { %v917_v4 = vpop.f32.mrf.mxu0 }
 0x1cf   : > { %2511 = vmatmul.msk.bf16.gmra.mxu2 %vm1108_vm2, %v3389_v2  ;;  %2546 = vmatmul.msk.bf16.gmra.mxu3 %vm1108_vm2, %v3389_v2  ;;  %v918_v9 = vadd.f32 %v3249_v40, %v917_v4 }
 0x1d1   : > { %2447 = vmatmul.msk.bf16.gmra.mxu0 %vm749_vm1, %v719_v3  ;;  %v2804_v3 = vld [vmem:[%s3889_s3 + $0x88] sm:$0xff] }
 0x1d2   : > { %v1293_v16 = vpop.f32.mrf.mxu2  ;;  %1646 = vmatpush.bf16.msrb.mxu2 %v2804_v3 }
 0x1d6   : > { %v919_v7 = vpop.f32.mrf.mxu0 }
 0x1d7   : > { %v920_v10 = vadd.f32 %v3249_v40, %v919_v7 }
 0x1d9   : > { %v1001_v11 = vmax.f32 %v918_v9, %v920_v10  ;;  %v2800_v9 = vld [vmem:[%s3889_s3 + $0x68] sm:$0xff] }
 0x1da   : > { %v3428_v37 = vpop.f32.mrf.mxu2  ;;  %1516 = vmatpush.bf16.msrb.mxu1 %v2800_v9 }
 0x1db   : > { %v1029_v14 = vmax.f32 %v1001_v11, 0.0 }
 0x1dc   : > { %v1164_v17 = vpop.f32.mrf.mxu1 }
 0x1dd   : > { %v3407_v18 = vadd.f32 %v1293_v16, %v1164_v17  ;;  %v3409_v19 = vpack.c.bf16 %v1029_v14, %v1028_v1 }
 0x1de   : > { %v922_v23 = vpop.f32.mrf.mxu0 }
 0x1df   : > { %2483 = vmatmul.msk.bf16.gmra.mxu1 %vm1108_vm2, %v3409_v19  ;;  %v923_v26 = vadd.f32 %v3249_v40, %v922_v23 }
 0x1e1   : > { %2448 = vmatmul.msk.bf16.gmra.mxu0 %vm749_vm1, %v720_v20 }
 0x1e4   : > { %v3430_v38 = vpop.f32.mrf.mxu1 }
 0x1e6   : > { %v924_v25 = vpop.f32.mrf.mxu0 }
 0x1e7   : > { %v925_v27 = vadd.f32 %v3249_v40, %v924_v25 }
 0x1e9   : > { %v1002_v28 = vmax.f32 %v923_v26, %v925_v27 }
 0x1eb   : > { %v1030_v32 = vmax.f32 %v1002_v28, 0.0 }
 0x1ed   : > { %v3421_v33 = vpack.c.bf16 %v1030_v32, %v1029_v14 }
 0x1ee   : > { %v927_v36 = vpop.f32.mrf.mxu0 }
 0x1ef   : > { %2512 = vmatmul.msk.bf16.gmra.mxu2 %vm1108_vm2, %v3421_v33  ;;  %2547 = vmatmul.msk.bf16.gmra.mxu3 %vm1108_vm2, %v3421_v33  ;;  %v928_v45 = vadd.f32 %v3249_v40, %v927_v36 }
 0x1f1   : > { %2449 = vmatmul.msk.bf16.gmra.mxu0 %vm749_vm1, %v721_v35 }
 0x1f2   : > { %v1298_v51 = vpop.f32.mrf.mxu2 }
 0x1f6   : > { %v929_v44 = vpop.f32.mrf.mxu0 }
 0x1f7   : > { %v930_v46 = vadd.f32 %v3249_v40, %v929_v44 }
 0x1f9   : > { %v1003_v47 = vmax.f32 %v928_v45, %v930_v46 }
 0x1fa   : > { %v3457_v10 = vpop.f32.mrf.mxu2 }
 0x1fb   : > { %v1031_v50 = vmax.f32 %v1003_v47, 0.0 }
 0x1fc   : > { %v1169_v53 = vpop.f32.mrf.mxu1 }
 0x1fd   : > { %v3436_v56 = vadd.f32 %v1298_v51, %v1169_v53  ;;  %v3438_v57 = vpack.c.bf16 %v1031_v50, %v1030_v32 }
 0x1fe   : > { %v932_v59 = vpop.f32.mrf.mxu0 }
 0x1ff   : > { %2484 = vmatmul.msk.bf16.gmra.mxu1 %vm1108_vm2, %v3438_v57  ;;  %v933_v61 = vadd.f32 %v3249_v40, %v932_v59 }
 0x201   : > { %2450 = vmatmul.msk.bf16.gmra.mxu0 %vm749_vm1, %v722_v58 }
 0x204   : > { %v3459_v11 = vpop.f32.mrf.mxu1 }
 0x206   : > { %v934_v60 = vpop.f32.mrf.mxu0 }
 0x207   : > { %v935_v63 = vadd.f32 %v3249_v40, %v934_v60 }
 0x209   : > { %v1004_v0 = vmax.f32 %v933_v61, %v935_v63  ;;  %v2799_v61 = vld [vmem:[%s3889_s3 + $0x60] sm:$0xff] }
 0x20a   : > { %1517 = vmatpush.bf16.msrb.mxu1 %v2799_v61 }
 0x20b   : > { %v1032_v1 = vmax.f32 %v1004_v0, 0.0 }
 0x20d   : > { %v3448_v4 = vpack.c.bf16 %v1032_v1, %v1031_v50  ;;  %v2803_v50 = vld [vmem:[%s3889_s3 + $0x80] sm:$0xff] }
 0x20e   : > { %v937_v7 = vpop.f32.mrf.mxu0  ;;  %1647 = vmatpush.bf16.msrb.mxu2 %v2803_v50 }
 0x20f   : > { %2513 = vmatmul.msk.bf16.gmra.mxu2 %vm1108_vm2, %v3448_v4  ;;  %2548 = vmatmul.msk.bf16.gmra.mxu3 %vm1108_vm2, %v3448_v4  ;;  %v938_v13 = vadd.f32 %v3249_v40, %v937_v7 }
 0x212   : > { %v1303_v17 = vpop.f32.mrf.mxu2 }
 0x216   : > { %v939_v12 = vpop.f32.mrf.mxu0 }
 0x217   : > { %v940_v14 = vadd.f32 %v3249_v40, %v939_v12 }
 0x219   : > { %v1005_v15 = vmax.f32 %v938_v13, %v940_v14 }
 0x21a   : > { %v3477_v36 = vpop.f32.mrf.mxu2 }
 0x21b   : > { %v1033_v16 = vmax.f32 %v1005_v15, 0.0 }
 0x21c   : > { %v1174_v20 = vpop.f32.mrf.mxu1 }
 0x21d   : > { %v3463_v23 = vadd.f32 %v1303_v17, %v1174_v20  ;;  %v3465_v24 = vpack.c.bf16 %v1033_v16, %v1032_v1 }
 0x21e   : > { %v942_v25 = vpop.f32.mrf.mxu0 }
 0x21f   : > { %2485 = vmatmul.msk.bf16.gmra.mxu1 %vm1108_vm2, %v3465_v24  ;;  %v943_v27 = vadd.f32 %v3249_v40, %v942_v25 }
 0x224   : > { %v3479_v44 = vpop.f32.mrf.mxu1 }
 0x226   : > { %v944_v26 = vpop.f32.mrf.mxu0 }
 0x227   : > { %v945_v28 = vadd.f32 %v3249_v40, %v944_v26 }
 0x229   : > { %v1006_v29 = vmax.f32 %v943_v27, %v945_v28 }
 0x22b   : > { %v1034_v30 = vmax.f32 %v1006_v29, 0.0 }
 0x22d   : > { %v3471_v32 = vpack.c.bf16 %v1034_v30, %v1033_v16 }
 0x22e   : > { %v947_v35 = vpop.f32.mrf.mxu0 }
 0x22f   : > { %2514 = vmatmul.msk.bf16.gmra.mxu2 %vm1108_vm2, %v3471_v32  ;;  %2549 = vmatmul.msk.bf16.gmra.mxu3 %vm1108_vm2, %v3471_v32  ;;  %v948_v46 = vadd.f32 %v3249_v40, %v947_v35 }
 0x232   : > { %v1308_v51 = vpop.f32.mrf.mxu2 }
 0x236   : > { %v949_v45 = vpop.f32.mrf.mxu0 }
 0x237   : > { %v950_v47 = vadd.f32 %v3249_v40, %v949_v45 }
 0x239   : > { %v1007_v48 = vmax.f32 %v948_v46, %v950_v47 }
 0x23a   : > { %v3503_v13 = vpop.f32.mrf.mxu2 }
 0x23b   : > { %v1035_v49 = vmax.f32 %v1007_v48, 0.0 }
 0x23c   : > { %v1179_v53 = vpop.f32.mrf.mxu1 }
 0x23d   : > { %v3486_v58 = vadd.f32 %v1308_v51, %v1179_v53  ;;  %v3488_v59 = vpack.c.bf16 %v1035_v49, %v1034_v30 }
 0x23e   : > { %v952_v60 = vpop.f32.mrf.mxu0 }
 0x23f   : > { %2486 = vmatmul.msk.bf16.gmra.mxu1 %vm1108_vm2, %v3488_v59  ;;  %v953_v0 = vadd.f32 %v3249_v40, %v952_v60 }
 0x244   : > { %v3505_v14 = vpop.f32.mrf.mxu1 }
 0x246   : > { %v954_v63 = vpop.f32.mrf.mxu0 }
 0x247   : > { %v955_v1 = vadd.f32 %v3249_v40, %v954_v63 }
 0x249   : > { %v1008_v3 = vmax.f32 %v953_v0, %v955_v1 }
 0x24b   : > { %v1036_v7 = vmax.f32 %v1008_v3, 0.0  ;;  %v693_v3 = vld [vmem:[%s3188_s15 + $0x1a0] sm:$0xff] }
 0x24d   : > { %v3497_v9 = vpack.c.bf16 %v1036_v7, %v1035_v49 }
 0x24e   : > { %v957_v12 = vpop.f32.mrf.mxu0 }
 0x24f   : > { %2515 = vmatmul.msk.bf16.gmra.mxu2 %vm1108_vm2, %v3497_v9  ;;  %2550 = vmatmul.msk.bf16.gmra.mxu3 %vm1108_vm2, %v3497_v9  ;;  %v958_v16 = vadd.f32 %v3249_v40, %v957_v12 }
 0x252   : > { %v1313_v26 = vpop.f32.mrf.mxu2 }
 0x256   : > { %v959_v15 = vpop.f32.mrf.mxu0 }
 0x257   : > { %v960_v17 = vadd.f32 %v3249_v40, %v959_v15 }
 0x259   : > { %v1009_v20 = vmax.f32 %v958_v16, %v960_v17 }
 0x25a   : > { %v3523_v51 = vpop.f32.mrf.mxu2 }
 0x25b   : > { %v1037_v25 = vmax.f32 %v1009_v20, 0.0 }
 0x25c   : > { %v1184_v27 = vpop.f32.mrf.mxu1 }
 0x25d   : > { %v3509_v28 = vadd.f32 %v1313_v26, %v1184_v27  ;;  %v3511_v29 = vpack.c.bf16 %v1037_v25, %v1036_v7  ;;  %v694_v7 = vld [vmem:[%s3188_s15 + $0x1a8] sm:$0xff] }
 0x25e   : > { %v962_v30 = vpop.f32.mrf.mxu0  ;;  %v723_v16 = vpack.c.bf16 %v694_v7, %v693_v3 }
 0x25f   : > { %2487 = vmatmul.msk.bf16.gmra.mxu1 %vm1108_vm2, %v3511_v29  ;;  %v963_v45 = vadd.f32 %v3249_v40, %v962_v30 }
 0x260   : > { %2451 = vmatmul.msk.bf16.gmra.mxu0 %vm749_vm1, %v723_v16 }
 0x264   : > { %v3525_v53 = vpop.f32.mrf.mxu1 }
 0x266   : > { %v964_v35 = vpop.f32.mrf.mxu0 }
 0x267   : > { %v965_v46 = vadd.f32 %v3249_v40, %v964_v35  ;;  %v695_v35 = vld [vmem:[%s3188_s15 + $0x1b0] sm:$0xff] }
 0x269   : > { %v1010_v47 = vmax.f32 %v963_v45, %v965_v46  ;;  %v696_v45 = vld [vmem:[%s3188_s15 + $0x1b8] sm:$0xff]  ;;  %s2341_s15 = scalar_lea.hbm %s3897_s11, %s2782_s13  ;;  %s2899_s13 = scalar_lea.hbm %s3897_s11, 16 }
 0x26a   : > { %s2345_s0 = sshll.u32 %s2341_s15, 4  ;;  %s2346_s0 = int_to_ptr.hbm [resolvable:$true] %s2345_s0 }
 0x26b   : > { %v1038_v48 = vmax.f32 %v1010_v47, 0.0  ;;  %v724_v47 = vpack.c.bf16 %v696_v45, %v695_v35  ;;  %s2893_s21 = sshra.s32 %s2346_s0, 4  ;;  %s2894_s21 = int_to_ptr.hbm [resolvable:$true] %s2893_s21 }
 0x26c   : > { %s2895_s2 = scalar_lea.hbm %s2894_s21, 8  ;;  %p2900_p2 = scmp.lt.s32.totalorder %s2894_s21, %s3897_s11 }
 0x26d   : > { %v3517_v49 = vpack.c.bf16 %v1038_v48, %v1037_v25  ;;  %p2896_p13 = scmp.ne.s32.totalorder %s2894_s21, %s2895_s2  ;;  %p2901_p3 = scmp.lt.s32.totalorder %s2899_s13, %s2895_s2 }
 0x26e   : > { %v967_v50 = vpop.f32.mrf.mxu0 }
 0x26f   : > { %2516 = vmatmul.msk.bf16.gmra.mxu2 %vm1108_vm2, %v3517_v49  ;;  %2551 = vmatmul.msk.bf16.gmra.mxu3 %vm1108_vm2, %v3517_v49  ;;  %v968_v61 = vadd.f32 %v3249_v40, %v967_v50  ;;  %p2897_p0 = pnand %p2896_p13, %p3041_p6  ;;  %p2902_p4 = por %p2901_p3, %p2900_p2 }
 0x270   : > { %2452 = vmatmul.msk.bf16.gmra.mxu0 %vm749_vm1, %v724_v47 }
 0x271   : > { %p2898_p1 = pneg %p2897_p0 }
 0x272   : > { %v1318_v12 = vpop.f32.mrf.mxu2 }
 0x273   : > { %p2903_p5 = pnand %p2902_p4, %p2898_p1 }
 0x276   : > { %v969_v60 = vpop.f32.mrf.mxu0 }
 0x277   : > { %v970_v63 = vadd.f32 %v3249_v40, %v969_v60 }
 0x279   : > { %v1011_v0 = vmax.f32 %v968_v61, %v970_v63 }
 0x27a   : > { %v3559_v60 = vpop.f32.mrf.mxu2 }
 0x27b   : > { %v1039_v1 = vmax.f32 %v1011_v0, 0.0 }
 0x27c   : > { %v1189_v15 = vpop.f32.mrf.mxu1 }
 0x27d   : > { %v3531_v17 = vadd.f32 %v1318_v12, %v1189_v15  ;;  %v3533_v20 = vpack.c.bf16 %v1039_v1, %v1038_v48 }
 0x27e   : > { %v972_v25 = vpop.f32.mrf.mxu0 }
 0x27f   : > { %2488 = vmatmul.msk.bf16.gmra.mxu1 %vm1108_vm2, %v3533_v20  ;;  %2613 = vmatmul.msk.bf16.vlgmr.msrb.gmra.mxu2 %vm1108_vm2, %v3295_v31  ;;  %v973_v26 = vadd.f32 %v3249_v40, %v972_v25  ;;  %v2810_v31 = vld [vmem:[%s3891_s5 + $0x18] sm:$0xff] }
 0x280   : > { %1833 = vmatpush.bf16.msrb.mxu3 %v2810_v31 }
 0x284   : > { %v3561_v61 = vpop.f32.mrf.mxu1 }
 0x286   : > { %v974_v27 = vpop.f32.mrf.mxu0 }
 0x287   : > { %v975_v30 = vadd.f32 %v3249_v40, %v974_v27 }
 0x289   : > { %v1012_v46 = vmax.f32 %v973_v26, %v975_v30 }
 0x28b   : > { %v3544_v48 = vmax.f32 %v1012_v46, 0.0 }
 0x28d   : > { %v3547_v50 = vpack.c.bf16 %v3544_v48, %v1039_v1 }
 0x28f   : > { %2552 = vmatmul.msk.bf16.gmra.mxu3 %vm1108_vm2, %v3547_v50  ;;  %2577 = vmatmul.msk.bf16.vlgmr.msrb.gmra.mxu1 %vm1108_vm2, %v3286_v21 }
 0x290   : > { %2614 = vmatmul.msk.bf16.gmra.mxu2 %vm1108_vm2, %v3315_v52 }
 0x292   : > { %v1323_v63 = vpop.f32.mrf.mxu2 }
 0x29a   : > { %v3573_v21 = vpop.f32.mrf.mxu2 }
 0x29c   : > { %v1194_v0 = vpop.f32.mrf.mxu1 }
 0x29d   : > { %v3563_v1 = vadd.f32 %v1323_v63, %v1194_v0 }
 0x29f   : > { %2578 = vmatmul.msk.bf16.gmra.mxu1 %vm1108_vm2, %v3306_v42 }
 0x2a0   : > { %2615 = vmatmul.msk.bf16.gmra.mxu2 %vm1108_vm2, %v3335_v8 }
 0x2a4   : > { %v3575_v52 = vpop.f32.mrf.mxu1 }
 0x2af   : > { %2579 = vmatmul.msk.bf16.gmra.mxu1 %vm1108_vm2, %v3326_v62 }
 0x2b0   : > { %2616 = vmatmul.msk.bf16.gmra.mxu2 %vm1108_vm2, %v3358_v34 }
 0x2b2   : > { %v1328_v3 = vpop.f32.mrf.mxu2 }
 0x2ba   : > { %v3587_v42 = vpop.f32.mrf.mxu2 }
 0x2bc   : > { %v1199_v7 = vpop.f32.mrf.mxu1 }
 0x2bd   : > { %v3577_v12 = vadd.f32 %v1328_v3, %v1199_v7  ;;  %v1286_v7 = vadd.f32 %v3370_v41, %v3372_v43 }
 0x2bf   : > { %2580 = vmatmul.msk.bf16.gmra.mxu1 %vm1108_vm2, %v3346_v22 }
 0x2c0   : > { %2617 = vmatmul.msk.bf16.gmra.mxu2 %vm1108_vm2, %v3389_v2 }
 0x2c4   : > { %v3589_v62 = vpop.f32.mrf.mxu1 }
 0x2cf   : > { %2581 = vmatmul.msk.bf16.gmra.mxu1 %vm1108_vm2, %v3380_v55  ;;  %v2809_v55 = vld [vmem:[%s3891_s5 + $0x10] sm:$0xff] }
 0x2d0   : > { %2618 = vmatmul.msk.bf16.gmra.mxu2 %vm1108_vm2, %v3421_v33  ;;  %1834 = vmatpush.bf16.msrb.mxu3 %v2809_v55 }
 0x2d2   : > { %v1333_v8 = vpop.f32.mrf.mxu2 }
 0x2da   : > { %v3597_v22 = vpop.f32.mrf.mxu2 }
 0x2dc   : > { %v1204_v34 = vpop.f32.mrf.mxu1 }
 0x2dd   : > { %v3591_v15 = vadd.f32 %v1333_v8, %v1204_v34 }
 0x2df   : > { %2582 = vmatmul.msk.bf16.gmra.mxu1 %vm1108_vm2, %v3409_v19  ;;  %v1391_v19 = vpop.f32.mrf.mxu3 }
 0x2e0   : > { %2619 = vmatmul.msk.bf16.gmra.mxu2 %vm1108_vm2, %v3448_v4  ;;  %v1450_v8 = vadd.f32 %v1391_v19, %v1286_v7 }
 0x2e4   : > { %v3606_v33 = vpop.f32.mrf.mxu1 }
 0x2ef   : > { %2583 = vmatmul.msk.bf16.gmra.mxu1 %vm1108_vm2, %v3438_v57  ;;  %v977_v57 = vpop.f32.mrf.mxu0 }
 0x2f0   : > { %2620 = vmatmul.msk.bf16.gmra.mxu2 %vm1108_vm2, %v3471_v32  ;;  %v1394_v32 = vpop.f32.mrf.mxu3  ;;  %v978_v41 = vadd.f32 %v3249_v40, %v977_v57  ;;  %v3643_v57 = vld [vmem:[%s3890_s4] ss:$0 sm:$0xff] }
 0x2f2   : > { %v1338_v2 = vpop.f32.mrf.mxu2 }
 0x2f7   : > { %v979_v35 = vpop.f32.mrf.mxu0 }
 0x2f8   : > { %v1396_v46 = vpop.f32.mrf.mxu3  ;;  %v980_v43 = vadd.f32 %v3249_v40, %v979_v35 }
 0x2fa   : > { %v1340_v16 = vpop.f32.mrf.mxu2 }
 0x2fc   : > { %v1209_v25 = vpop.f32.mrf.mxu1 }
 0x2fd   : > { %v3608_v4 = vadd.f32 %v1338_v2, %v1209_v25  ;;  %v1451_v25 = vadd.f32 %v1394_v32, %v3378_v54 }
 0x2ff   : > { %2584 = vmatmul.msk.bf16.gmra.mxu1 %vm1108_vm2, %v3465_v24 }
 0x300   : > { %2621 = vmatmul.msk.bf16.gmra.mxu2 %vm1108_vm2, %v3497_v9  ;;  %v982_v9 = vpop.f32.mrf.mxu0  ;;  %v1399_v0 = vpop.f32.mrf.mxu3 }
 0x301   : > { %v983_v54 = vadd.f32 %v3249_v40, %v982_v9 }
 0x302   : > { %v1649_v26 = vpop.f32.mrf.mxu2 }
 0x304   : > { %v1211_v27 = vpop.f32.mrf.mxu1 }
 0x305   : > { %v3614_v30 = vadd.f32 %v1340_v16, %v1211_v27 }
 0x308   : > { %v984_v16 = vpop.f32.mrf.mxu0 }
 0x309   : > { %v985_v19 = vadd.f32 %v3249_v40, %v984_v16 }
 0x30a   : > { %v1651_v45 = vpop.f32.mrf.mxu2 }
 0x30c   : > { %v1519_v47 = vpop.f32.mrf.mxu1 }
 0x30d   : > { %v1579_v31 = vadd.f32 %v1519_v47, %v3368_v39  ;;  %v1401_v39 = vpop.f32.mrf.mxu3  ;;  %v1013_v47 = vmax.f32 %v978_v41, %v980_v43 }
 0x30f   : > { %v1709_v63 = vadd.f32 %v1649_v26, %v1579_v31  ;;  %2585 = vmatmul.msk.bf16.gmra.mxu1 %vm1108_vm2, %v3488_v59  ;;  %v2816_v59 = vld [vmem:[%s3891_s5 + $0x48] sm:$0xff]  ;;  %v1014_v31 = vmax.f32 %v983_v54, %v985_v19  ;;  %v1296_v54 = vadd.f32 %v3428_v37, %v3430_v38  ;;  %v2813_v37 = vld [vmem:[%s3891_s5 + $0x30] sm:$0xff] }
 0x310   : > { %2622 = vmatmul.msk.bf16.gmra.mxu2 %vm1108_vm2, %v3517_v49  ;;  %v2814_v49 = vld [vmem:[%s3891_s5 + $0x38] sm:$0xff] }
 0x311   : > { %2052 = vmatpush.bf16.msra.mxu2 %v2816_v59  ;;  %1994 = vmatpush.bf16.msra.mxu1 %v2814_v49 }
 0x313   : > { %v1654_v24 = vpop.f32.mrf.mxu2 }
 0x314   : > { %v1521_v3 = vpop.f32.mrf.mxu1 }
 0x315   : > { %v1580_v2 = vadd.f32 %v1521_v3, %v1450_v8  ;;  %v1404_v7 = vpop.f32.mrf.mxu3  ;;  %v1042_v8 = vmax.f32 %v1014_v31, 0.0  ;;  %1995 = vmatpush.bf16.msra.mxu1 %v2813_v37 }
 0x316   : > { %v1455_v38 = vadd.f32 %v1404_v7, %v3436_v56 }
 0x317   : > { %v1710_v32 = vadd.f32 %v1651_v45, %v1580_v2  ;;  %v1041_v45 = vmax.f32 %v1013_v47, 0.0 }
 0x319   : > { %v1738_v9 = vadd.f32 %v3643_v57, %v1710_v32  ;;  %v1603_v49 = vpack.c.bf16 %v1042_v8, %v1041_v45 }
 0x31b   : > { %v1656_v34 = vpop.f32.mrf.mxu2 }
 0x31c   : > { %v1524_v55 = vpop.f32.mrf.mxu1 }
 0x31d   : > { %v1581_v26 = vadd.f32 %v1524_v55, %v1451_v25 }
 0x31f   : > { %2586 = vmatmul.msk.bf16.gmra.mxu1 %vm1108_vm2, %v3511_v29  ;;  %v1291_v29 = vadd.f32 %v3396_v5, %v3398_v6  ;;  %v1711_v40 = vadd.f32 %v1654_v24, %v1581_v26  ;;  %v1737_v5 = vadd.f32 %v3643_v57, %v1709_v63  ;;  %v1453_v24 = vadd.f32 %v1399_v0, %v3407_v18 }
 0x320   : > { %2623 = vmatmul.msk.bf16.gmra.mxu2 %vm1108_vm2, %v3547_v50 }
 0x321   : > { %v1452_v27 = vadd.f32 %v1396_v46, %v1291_v29  ;;  %v1761_v46 = vmax.f32 %v1737_v5, %v1738_v9  ;;  %v1739_v55 = vadd.f32 %v3643_v57, %v1711_v40  ;;  %v1454_v29 = vadd.f32 %v1401_v39, %v1296_v54 }
 0x323   : > { %v1659_v50 = vpop.f32.mrf.mxu2  ;;  %v3649_v41 = vmax.f32 %v1761_v46, 0.0 }
 0x324   : > { %v1526_v35 = vpop.f32.mrf.mxu1 }
 0x325   : > { %v1582_v3 = vadd.f32 %v1526_v35, %v1452_v27 }
 0x327   : > { %v1712_v6 = vadd.f32 %v1656_v34, %v1582_v3  ;;  %v1406_v34 = vpop.f32.mrf.mxu3 }
 0x329   : > { %v1740_v2 = vadd.f32 %v3643_v57, %v1712_v6 }
 0x32b   : > { %v1762_v16 = vmax.f32 %v1739_v55, %v1740_v2  ;;  %v1661_v25 = vpop.f32.mrf.mxu2 }
 0x32c   : > { %v1529_v59 = vpop.f32.mrf.mxu1 }
 0x32d   : > { %v3651_v43 = vmax.f32 %v1762_v16, 0.0  ;;  %v1583_v19 = vadd.f32 %v1529_v59, %v1453_v24 }
 0x32f   : > { %v1785_v63 = vpack.c.bf16 %v3651_v43, %v3649_v41  ;;  %2587 = vmatmul.msk.bf16.gmra.mxu1 %vm1108_vm2, %v3533_v20  ;;  %v1713_v27 = vadd.f32 %v1659_v50, %v1583_v19  ;;  %v1409_v18 = vpop.f32.mrf.mxu3  ;;  %v1473_v20 = vpack.c.bf16 %v1041_v45, %v3544_v48  ;;  %v1301_v50 = vadd.f32 %v3457_v10, %v3459_v11  ;;  %v2815_v10 = vld [vmem:[%s3891_s5 + $0x40] sm:$0xff] }
 0x330   : > { %2624 = vmatmul.msk.bf16.gmra.mxu2 %vm1108_vm2, %v1603_v49  ;;  %v1457_v11 = vadd.f32 %v1409_v18, %v3463_v23  ;;  %v1306_v19 = vadd.f32 %v3477_v36, %v3479_v44 }
 0x331   : > { %v1741_v0 = vadd.f32 %v3643_v57, %v1713_v27  ;;  %v1456_v45 = vadd.f32 %v1406_v34, %v1301_v50  ;;  %2053 = vmatpush.bf16.msra.mxu2 %v2815_v10 }
 0x333   : > { %v1664_v32 = vpop.f32.mrf.mxu2 }
 0x334   : > { %v1531_v26 = vpop.f32.mrf.mxu1 }
 0x335   : > { %v1584_v47 = vadd.f32 %v1531_v26, %v1454_v29 }
 0x337   : > { %v1714_v35 = vadd.f32 %v1661_v25, %v1584_v47  ;;  %v1411_v6 = vpop.f32.mrf.mxu3 }
 0x338   : > { %v1458_v26 = vadd.f32 %v1411_v6, %v1306_v19 }
 0x339   : > { %v1742_v31 = vadd.f32 %v3643_v57, %v1714_v35 }
 0x33b   : > { %v1763_v9 = vmax.f32 %v1741_v0, %v1742_v31  ;;  %v1666_v40 = vpop.f32.mrf.mxu2 }
 0x33c   : > { %v1534_v3 = vpop.f32.mrf.mxu1 }
 0x33d   : > { %v1775_v5 = vmax.f32 %v1763_v9, 0.0  ;;  %v1585_v48 = vadd.f32 %v1534_v3, %v1455_v38  ;;  %v1311_v38 = vadd.f32 %v3503_v13, %v3505_v14 }
 0x33f   : > { %v1793_v39 = vpack.c.bf16 %v1775_v5, %v3651_v43  ;;  %2588 = vmatmul.msk.bf16.gmra.mxu1 %vm1108_vm2, %v1473_v20  ;;  %v1715_v55 = vadd.f32 %v1664_v32, %v1585_v48  ;;  %v1414_v25 = vpop.f32.mrf.mxu3  ;;  %v2808_v32 = vld [vmem:[%s3891_s5 + $0x8] sm:$0xff] }
 0x340   : > { %1886 = vmatpush.bf16.msra.mxu3 %v2808_v32 }
 0x341   : > { %2637 = vmatmul.msk.bf16.vlgmr.msrb.gmra.mxu3 %vm1814_vm3, %v1793_v39  ;;  %v1743_v56 = vadd.f32 %v3643_v57, %v1715_v55 }
 0x343   : > { %v1669_v8 = vpop.f32.mrf.mxu2 }
 0x344   : > { %v1536_v46 = vpop.f32.mrf.mxu1 }
 0x345   : > { %v1586_v2 = vadd.f32 %v1536_v46, %v1456_v45 }
 0x347   : > { %v1716_v16 = vadd.f32 %v1666_v40, %v1586_v2  ;;  %v1416_v47 = vpop.f32.mrf.mxu3 }
 0x348   : > { %v1460_v50 = vadd.f32 %v1416_v47, %v1311_v38 }
 0x349   : > { %v1744_v7 = vadd.f32 %v3643_v57, %v1716_v16 }
 0x34b   : > { %v1764_v59 = vmax.f32 %v1743_v56, %v1744_v7  ;;  %v1671_v49 = vpop.f32.mrf.mxu2 }
 0x34c   : > { %v1539_v24 = vpop.f32.mrf.mxu1 }
 0x34d   : > { %v1776_v54 = vmax.f32 %v1764_v59, 0.0  ;;  %v1587_v29 = vadd.f32 %v1539_v24, %v1457_v11 }
 0x34f   : > { %v3679_v34 = vpack.c.bf16 %v1776_v54, %v1775_v5  ;;  %v1717_v0 = vadd.f32 %v1669_v8, %v1587_v29  ;;  %v1419_v36 = vpop.f32.mrf.mxu3  ;;  %v1459_v5 = vadd.f32 %v1414_v25, %v3486_v58 }
 0x350   : > { %v1461_v25 = vadd.f32 %v1419_v36, %v3509_v28 }
 0x351   : > { %v1745_v23 = vadd.f32 %v3643_v57, %v1717_v0 }
 0x353   : > { %v1674_v27 = vpop.f32.mrf.mxu2 }
 0x354   : > { %v1541_v35 = vpop.f32.mrf.mxu1 }
 0x355   : > { %v1588_v31 = vadd.f32 %v1541_v35, %v1458_v26 }
 0x357   : > { %v1718_v20 = vadd.f32 %v1671_v49, %v1588_v31  ;;  %v1421_v46 = vpop.f32.mrf.mxu3  ;;  %v1316_v49 = vadd.f32 %v3523_v51, %v3525_v53  ;;  %v2832_v31 = vld [vmem:[%s3895_s9 + $0x38] sm:$0xff] }
 0x358   : > { %2315 = vmatpush.bf16.msrb.mxu0 %v2832_v31 }
 0x359   : > { %v1746_v18 = vadd.f32 %v3643_v57, %v1718_v20  ;;  %v1462_v10 = vadd.f32 %v1421_v46, %v1316_v49  ;;  %v1326_v46 = vadd.f32 %v3573_v21, %v3575_v52 }
 0x35b   : > { %v1765_v9 = vmax.f32 %v1745_v23, %v1746_v18  ;;  %v1676_v40 = vpop.f32.mrf.mxu2 }
 0x35c   : > { %v1544_v44 = vpop.f32.mrf.mxu1 }
 0x35d   : > { %v1777_v3 = vmax.f32 %v1765_v9, 0.0  ;;  %v1589_v39 = vadd.f32 %v1544_v44, %v1459_v5  ;;  %v1321_v9 = vadd.f32 %v3559_v60, %v3561_v61 }
 0x35f   : > { %v1794_v37 = vpack.c.bf16 %v1777_v3, %v1776_v54  ;;  %v1719_v45 = vadd.f32 %v1674_v27, %v1589_v39  ;;  %v1424_v14 = vpop.f32.mrf.mxu3  ;;  %v2807_v54 = vld [vmem:[%s3891_s5] sm:$0xff] }
 0x360   : > { %1887 = vmatpush.bf16.msra.mxu3 %v2807_v54  ;;  %v1463_v20 = vadd.f32 %v1424_v14, %v3531_v17 }
 0x361   : > { %2638 = vmatmul.msk.bf16.gmra.mxu3 %vm1814_vm3, %v1794_v37  ;;  %2681 = vmatmul.msk.bf16.vlgmr.msra.gmra.mxu1 %vm1814_vm3, %v1794_v37  ;;  %v1747_v2 = vadd.f32 %v3643_v57, %v1719_v45 }
 0x363   : > { %v1679_v48 = vpop.f32.mrf.mxu2 }
 0x364   : > { %v1546_v6 = vpop.f32.mrf.mxu1 }
 0x365   : > { %v1590_v8 = vadd.f32 %v1546_v6, %v1460_v50 }
 0x367   : > { %v1720_v55 = vadd.f32 %v1676_v40, %v1590_v8  ;;  %v1426_v26 = vpop.f32.mrf.mxu3 }
 0x368   : > { %v1464_v36 = vadd.f32 %v1426_v26, %v1321_v9  ;;  %v2831_v9 = vld [vmem:[%s3895_s9 + $0x30] sm:$0xff] }
 0x369   : > { %v1748_v58 = vadd.f32 %v3643_v57, %v1720_v55  ;;  %2316 = vmatpush.bf16.msrb.mxu0 %v2831_v9 }
 0x36b   : > { %v1766_v16 = vmax.f32 %v1747_v2, %v1748_v58  ;;  %v1681_v56 = vpop.f32.mrf.mxu2  ;;  %v2812_v2 = vld [vmem:[%s3891_s5 + $0x28] sm:$0xff] }
 0x36c   : > { %v1549_v7 = vpop.f32.mrf.mxu1  ;;  %1936 = vmatpush.bf16.msrb.mxu3 %v2812_v2 }
 0x36d   : > { %v1778_v13 = vmax.f32 %v1766_v16, 0.0  ;;  %v1591_v24 = vadd.f32 %v1549_v7, %v1461_v25 }
 0x36f   : > { %v3696_v59 = vpack.c.bf16 %v1778_v13, %v1777_v3  ;;  %v1721_v29 = vadd.f32 %v1679_v48, %v1591_v24  ;;  %v1429_v18 = vpop.f32.mrf.mxu3 }
 0x370   : > { %v1465_v61 = vadd.f32 %v1429_v18, %v3563_v1 }
 0x371   : > { %2697 = vmatmul.msk.bf16.vlgmr.msra.gmra.mxu2 %vm1814_vm3, %v3696_v59  ;;  %v1749_v27 = vadd.f32 %v3643_v57, %v1721_v29  ;;  %v1331_v29 = vadd.f32 %v3587_v42, %v3589_v62 }
 0x373   : > { %v1684_v11 = vpop.f32.mrf.mxu2 }
 0x374   : > { %v1551_v19 = vpop.f32.mrf.mxu1 }
 0x375   : > { %v1592_v32 = vadd.f32 %v1551_v19, %v1462_v10 }
 0x377   : > { %v1722_v28 = vadd.f32 %v1681_v56, %v1592_v32  ;;  %v1431_v50 = vpop.f32.mrf.mxu3 }
 0x378   : > { %v1466_v16 = vadd.f32 %v1431_v50, %v1326_v46 }
 0x379   : > { %v1750_v51 = vadd.f32 %v3643_v57, %v1722_v28 }
 0x37b   : > { %v1767_v53 = vmax.f32 %v1749_v27, %v1750_v51  ;;  %v1686_v47 = vpop.f32.mrf.mxu2 }
 0x37c   : > { %v1554_v35 = vpop.f32.mrf.mxu1 }
 0x37d   : > { %v1779_v0 = vmax.f32 %v1767_v53, 0.0  ;;  %v1593_v40 = vadd.f32 %v1554_v35, %v1463_v20 }
 0x37f   : > { %v1795_v23 = vpack.c.bf16 %v1779_v0, %v1778_v13  ;;  %v1723_v5 = vadd.f32 %v1684_v11, %v1593_v40  ;;  %v1434_v58 = vpop.f32.mrf.mxu3  ;;  %v1336_v40 = vadd.f32 %v3597_v22, %v3606_v33 }
 0x380   : > { %v1467_v11 = vadd.f32 %v1434_v58, %v3577_v12 }
 0x381   : > { %2639 = vmatmul.msk.bf16.gmra.mxu3 %vm1814_vm3, %v1795_v23  ;;  %2682 = vmatmul.msk.bf16.gmra.mxu1 %vm1814_vm3, %v1795_v23  ;;  %v1751_v39 = vadd.f32 %v3643_v57, %v1723_v5 }
 0x383   : > { %v1689_v44 = vpop.f32.mrf.mxu2 }
 0x384   : > { %v1556_v3 = vpop.f32.mrf.mxu1 }
 0x385   : > { %v1594_v37 = vadd.f32 %v1556_v3, %v1464_v36 }
 0x387   : > { %v1724_v38 = vadd.f32 %v1686_v47, %v1594_v37  ;;  %v1436_v49 = vpop.f32.mrf.mxu3 }
 0x388   : > { %v1468_v28 = vadd.f32 %v1436_v49, %v1331_v29 }
 0x389   : > { %v1752_v17 = vadd.f32 %v3643_v57, %v1724_v38 }
 0x38b   : > { %v1768_v48 = vmax.f32 %v1751_v39, %v1752_v17  ;;  %v1691_v6 = vpop.f32.mrf.mxu2 }
 0x38c   : > { %v1559_v45 = vpop.f32.mrf.mxu1 }
 0x38d   : > { %v1780_v60 = vmax.f32 %v1768_v48, 0.0  ;;  %v1595_v55 = vadd.f32 %v1559_v45, %v1465_v61 }
 0x38f   : > { %v3718_v8 = vpack.c.bf16 %v1780_v60, %v1779_v0  ;;  %v1725_v13 = vadd.f32 %v1689_v44, %v1595_v55  ;;  %v1439_v26 = vpop.f32.mrf.mxu3 }
 0x390   : > { %v1469_v62 = vadd.f32 %v1439_v26, %v3591_v15  ;;  %v2811_v15 = vld [vmem:[%s3891_s5 + $0x20] sm:$0xff] }
 0x391   : > { %2698 = vmatmul.msk.bf16.gmra.mxu2 %vm1814_vm3, %v3718_v8  ;;  %v1753_v25 = vadd.f32 %v3643_v57, %v1725_v13  ;;  %1937 = vmatpush.bf16.msrb.mxu3 %v2811_v15  ;;  %v3802_v15 = vld [vmem:[%s3892_s6] ss:$0 sm:$0xff] }
 0x393   : > { %v1694_v56 = vpop.f32.mrf.mxu2 }
 0x394   : > { %v1561_v7 = vpop.f32.mrf.mxu1 }
 0x395   : > { %v1596_v1 = vadd.f32 %v1561_v7, %v1466_v16 }
 0x397   : > { %v1726_v14 = vadd.f32 %v1691_v6, %v1596_v1  ;;  %v1441_v42 = vpop.f32.mrf.mxu3 }
 0x398   : > { %v1470_v3 = vadd.f32 %v1441_v42, %v1336_v40 }
 0x399   : > { %v1754_v21 = vadd.f32 %v3643_v57, %v1726_v14 }
 0x39b   : > { %v1769_v52 = vmax.f32 %v1753_v25, %v1754_v21  ;;  %v1696_v10 = vpop.f32.mrf.mxu2 }
 0x39c   : > { %v1564_v24 = vpop.f32.mrf.mxu1 }
 0x39d   : > { %v1781_v54 = vmax.f32 %v1769_v52, 0.0  ;;  %v1597_v32 = vadd.f32 %v1564_v24, %v1467_v11  ;;  %v2829_v24 = vld [vmem:[%s3895_s9 + $0x20] sm:$0xff] }
 0x39f   : > { %v1796_v19 = vpack.c.bf16 %v1781_v54, %v1780_v60  ;;  %v1727_v51 = vadd.f32 %v1694_v56, %v1597_v32  ;;  %v1444_v22 = vpop.f32.mrf.mxu3  ;;  %v2828_v32 = vld [vmem:[%s3895_s9 + $0x18] sm:$0xff] }
 0x3a0   : > { %v1471_v48 = vadd.f32 %v1444_v22, %v3608_v4 }
 0x3a1   : > { %2640 = vmatmul.msk.bf16.gmra.mxu3 %vm1814_vm3, %v1796_v19  ;;  %2683 = vmatmul.msk.bf16.gmra.mxu1 %vm1814_vm3, %v1796_v19  ;;  %v1755_v0 = vadd.f32 %v3643_v57, %v1727_v51 }
 0x3a3   : > { %v1699_v35 = vpop.f32.mrf.mxu2 }
 0x3a4   : > { %v1566_v27 = vpop.f32.mrf.mxu1 }
 0x3a5   : > { %v1598_v53 = vadd.f32 %v1566_v27, %v1468_v28  ;;  %v2819_v28 = vld [vmem:[%s3893_s7 + $0x10] sm:$0xff] }
 0x3a7   : > { %v1728_v47 = vadd.f32 %v1696_v10, %v1598_v53  ;;  %v1446_v45 = vpop.f32.mrf.mxu3 }
 0x3a8   : > { %v1472_v61 = vadd.f32 %v1446_v45, %v3614_v30  ;;  %v2830_v30 = vld [vmem:[%s3895_s9 + $0x28] sm:$0xff] }
 0x3a9   : > { %v1756_v12 = vadd.f32 %v3643_v57, %v1728_v47  ;;  %2317 = vmatpush.bf16.msrb.mxu0 %v2830_v30 }
 0x3ab   : > { %v1770_v31 = vmax.f32 %v1755_v0, %v1756_v12  ;;  %v1701_v44 = vpop.f32.mrf.mxu2 }
 0x3ac   : > { %v1569_v20 = vpop.f32.mrf.mxu1 }
 0x3ad   : > { %v1782_v23 = vmax.f32 %v1770_v31, 0.0  ;;  %v1599_v36 = vadd.f32 %v1569_v20, %v1469_v62  ;;  %2318 = vmatpush.bf16.msrb.mxu0 %v2829_v24 }
 0x3af   : > { %v1909_v18 = vpack.c.bf16 %v1782_v23, %v1781_v54  ;;  %v1729_v37 = vadd.f32 %v1699_v35, %v1599_v36 }
 0x3b1   : > { %2649 = vmatmul.msk.bf16.vlgmr.msra.gmra.mxu3 %vm1814_vm3, %v1785_v63  ;;  %2699 = vmatmul.msk.bf16.gmra.mxu2 %vm1814_vm3, %v1909_v18  ;;  %v1757_v39 = vadd.f32 %v3643_v57, %v1729_v37 }
 0x3b2   : > { %2319 = vmatpush.bf16.msrb.mxu0 %v2828_v32 }
 0x3b3   : > { %v1704_v43 = vpop.f32.mrf.mxu2 }
 0x3b4   : > { %v1571_v5 = vpop.f32.mrf.mxu1 }
 0x3b5   : > { %v1600_v38 = vadd.f32 %v1571_v5, %v1470_v3 }
 0x3b7   : > { %v1730_v33 = vadd.f32 %v1701_v44, %v1600_v38 }
 0x3b9   : > { %v1758_v41 = vadd.f32 %v3643_v57, %v1730_v33 }
 0x3bb   : > { %v1771_v63 = vmax.f32 %v1757_v39, %v1758_v41  ;;  %v1706_v55 = vpop.f32.mrf.mxu2 }
 0x3bc   : > { %v1574_v17 = vpop.f32.mrf.mxu1 }
 0x3bd   : > { %v1783_v50 = vmax.f32 %v1771_v63, 0.0  ;;  %v1601_v60 = vadd.f32 %v1574_v17, %v1471_v48  ;;  %v2817_v63 = vld [vmem:[%s3893_s7] sm:$0xff] }
 0x3bf   : > { %v1967_v6 = vpack.c.bf16 %v1783_v50, %v1782_v23  ;;  %v1731_v2 = vadd.f32 %v1704_v43, %v1601_v60 }
 0x3c1   : > { %2650 = vmatmul.msk.bf16.gmra.mxu3 %vm1814_vm3, %v3679_v34  ;;  %2684 = vmatmul.msk.bf16.gmra.mxu1 %vm1814_vm3, %v1967_v6  ;;  %v1759_v56 = vadd.f32 %v3643_v57, %v1731_v2 }
 0x3c4   : > { %v1576_v46 = vpop.f32.mrf.mxu1  ;;  %v1836_v14 = vpop.f32.mrf.mxu3 }
 0x3c5   : > { %v1602_v58 = vadd.f32 %v1576_v46, %v1472_v61 }
 0x3c7   : > { %v1732_v16 = vadd.f32 %v1706_v55, %v1602_v58 }
 0x3c9   : > { %v1760_v7 = vadd.f32 %v3643_v57, %v1732_v16 }
 0x3cb   : > { %v1772_v4 = vmax.f32 %v1759_v56, %v1760_v7 }
 0x3cc   : > { %v1838_v57 = vpop.f32.mrf.mxu3 }
 0x3cd   : > { %v1784_v13 = vmax.f32 %v1772_v4, 0.0 }
 0x3cf   : > { %v2025_v1 = vpack.c.bf16 %v1784_v13, %v1783_v50 }
 0x3d1   : > { %2651 = vmatmul.msk.bf16.gmra.mxu3 %vm1814_vm3, %v3696_v59  ;;  %2700 = vmatmul.msk.bf16.gmra.mxu2 %vm1814_vm3, %v2025_v1 }
 0x3de   : > { %v1997_v47 = vpop.f32.mrf.mxu1 }
 0x3e1   : > { %2652 = vmatmul.msk.bf16.gmra.mxu3 %vm1814_vm3, %v3718_v8 }
 0x3e4   : > { %v1841_v25 = vpop.f32.mrf.mxu3 }
 0x3e6   : > { %v1999_v20 = vpop.f32.mrf.mxu1 }
 0x3ec   : > { %v1843_v21 = vpop.f32.mrf.mxu3 }
 0x3f1   : > { %2665 = vmatmul.msk.bf16.vlgmr.msrb.gmra.mxu3 %vm1814_vm3, %v3679_v34 }
 0x3f4   : > { %v2055_v35 = vpop.f32.mrf.mxu2 }
 0x3fc   : > { %v2057_v23 = vpop.f32.mrf.mxu2 }
 0x3fe   : > { %v2002_v3 = vpop.f32.mrf.mxu1 }
 0x401   : > { %2666 = vmatmul.msk.bf16.gmra.mxu3 %vm1814_vm3, %v3696_v59  ;;  %v2820_v59 = vld [vmem:[%s3893_s7 + $0x18] sm:$0xff] }
 0x402   : > { %2135 = vmatpush.bf16.msra.mxu3 %v2820_v59 }
 0x404   : > { %v3773_v52 = vpop.f32.mrf.mxu3 }
 0x406   : > { %2136 = vmatpush.bf16.msra.mxu3 %v2819_v28  ;;  %v2004_v17 = vpop.f32.mrf.mxu1 }
 0x40c   : > { %v3775_v49 = vpop.f32.mrf.mxu3 }
 0x411   : > { %2667 = vmatmul.msk.bf16.gmra.mxu3 %vm1814_vm3, %v3718_v8 }
 0x414   : > { %v2060_v37 = vpop.f32.mrf.mxu2 }
 0x41c   : > { %v2062_v6 = vpop.f32.mrf.mxu2 }
 0x41e   : > { %v2007_v2 = vpop.f32.mrf.mxu1 }
 0x421   : > { %2668 = vmatmul.msk.bf16.gmra.mxu3 %vm1814_vm3, %v1909_v18  ;;  %v2818_v18 = vld [vmem:[%s3893_s7 + $0x8] sm:$0xff] }
 0x422   : > { %2163 = vmatpush.bf16.msrb.mxu3 %v2818_v18 }
 0x424   : > { %v1851_v34 = vpop.f32.mrf.mxu3 }
 0x426   : > { %2164 = vmatpush.bf16.msrb.mxu3 %v2817_v63 }
 0x42c   : > { %v3781_v54 = vpop.f32.mrf.mxu3 }
 0x434   : > { %v1889_v10 = vpop.f32.mrf.mxu3  ;;  %v2065_v56 = vpop.f32.mrf.mxu2 }
 0x435   : > { %v1890_v12 = vadd.f32 %v1889_v10, %v1836_v14  ;;  %v2822_v14 = vld [vmem:[%s3893_s7 + $0x28] sm:$0xff]  ;;  %v2821_v10 = vld [vmem:[%s3893_s7 + $0x20] sm:$0xff] }
 0x43c   : > { %v1891_v8 = vpop.f32.mrf.mxu3 }
 0x43d   : > { %v1892_v42 = vadd.f32 %v1891_v8, %v1838_v57  ;;  %v2067_v8 = vpop.f32.mrf.mxu2 }
 0x444   : > { %v1894_v11 = vpop.f32.mrf.mxu3 }
 0x445   : > { %v1895_v39 = vadd.f32 %v1894_v11, %v1841_v25  ;;  %v2827_v25 = vld [vmem:[%s3895_s9 + $0x10] sm:$0xff] }
 0x446   : > { %2320 = vmatpush.bf16.msrb.mxu0 %v2827_v25 }
 0x44c   : > { %v1896_v19 = vpop.f32.mrf.mxu3 }
 0x44d   : > { %v1897_v50 = vadd.f32 %v1896_v19, %v1843_v21 }
 0x454   : > { %v1899_v29 = vpop.f32.mrf.mxu3 }
 0x455   : > { %v1900_v4 = vadd.f32 %v1899_v29, %v3773_v52 }
 0x45c   : > { %v1901_v26 = vpop.f32.mrf.mxu3 }
 0x45d   : > { %v1902_v21 = vadd.f32 %v1901_v26, %v3775_v49 }
 0x464   : > { %v1904_v27 = vpop.f32.mrf.mxu3 }
 0x465   : > { %v3792_v51 = vadd.f32 %v1904_v27, %v1851_v34  ;;  %v2009_v34 = vpop.f32.mrf.mxu1 }
 0x46c   : > { %v3794_v53 = vpop.f32.mrf.mxu3 }
 0x46d   : > { %v2012_v28 = vpop.f32.mrf.mxu1 }
 0x474   : > { %v1939_v0 = vpop.f32.mrf.mxu3 }
 0x475   : > { %v1959_v31 = vadd.f32 %v1939_v0, %v1890_v12  ;;  %v2824_v12 = vld [vmem:[%s3893_s7 + $0x38] sm:$0xff] }
 0x477   : > { %v2017_v62 = vadd.f32 %v1997_v47, %v1959_v31 }
 0x479   : > { %v2075_v36 = vadd.f32 %v2055_v35, %v2017_v62  ;;  %v2070_v35 = vpop.f32.mrf.mxu2 }
 0x47b   : > { %v2087_v38 = vadd.f32 %v3802_v15, %v2075_v36 }
 0x47c   : > { %v1941_v9 = vpop.f32.mrf.mxu3 }
 0x47d   : > { %v1960_v40 = vadd.f32 %v1941_v9, %v1892_v42  ;;  %v2826_v42 = vld [vmem:[%s3895_s9 + $0x8] sm:$0xff]  ;;  %v2014_v9 = vpop.f32.mrf.mxu1 }
 0x47e   : > { %2321 = vmatpush.bf16.msrb.mxu0 %v2826_v42 }
 0x47f   : > { %v2018_v44 = vadd.f32 %v1999_v20, %v1960_v40  ;;  %v1907_v20 = vadd.f32 %v3794_v53, %v3781_v54 }
 0x481   : > { %v2076_v5 = vadd.f32 %v2057_v23, %v2018_v44  ;;  %v2072_v44 = vpop.f32.mrf.mxu2 }
 0x483   : > { %v2088_v22 = vadd.f32 %v3802_v15, %v2076_v5 }
 0x484   : > { %v1944_v33 = vpop.f32.mrf.mxu3 }
 0x485   : > { %v2095_v41 = vmax.f32 %v2087_v38, %v2088_v22  ;;  %v1961_v43 = vadd.f32 %v1944_v33, %v1895_v39  ;;  %v2825_v39 = vld [vmem:[%s3895_s9] sm:$0xff] }
 0x486   : > { %2322 = vmatpush.bf16.msrb.mxu0 %v2825_v39 }
 0x487   : > { %v2019_v48 = vadd.f32 %v2002_v3, %v1961_v43  ;;  %v2099_v27 = vmax.f32 %v2095_v41, 0.0 }
 0x489   : > { %v2077_v61 = vadd.f32 %v2060_v37, %v2019_v48  ;;  %v2103_v31 = vpack.c.bf16 %v2099_v27, %v2099_v27 }
 0x48b   : > { %v2089_v58 = vadd.f32 %v3802_v15, %v2077_v61 }
 0x48c   : > { %v1946_v45 = vpop.f32.mrf.mxu3 }
 0x48d   : > { %v1962_v60 = vadd.f32 %v1946_v45, %v1897_v50  ;;  %v2877_v45 = vld [vmem:[%s3894_s8] ss:$0 sm:$0xff] }
 0x48f   : > { %v2020_v46 = vadd.f32 %v2004_v17, %v1962_v60 }
 0x491   : > { %v2078_v55 = vadd.f32 %v2062_v6, %v2020_v46 }
 0x493   : > { %v2090_v16 = vadd.f32 %v3802_v15, %v2078_v55 }
 0x494   : > { %v1949_v7 = vpop.f32.mrf.mxu3 }
 0x495   : > { %v2096_v13 = vmax.f32 %v2089_v58, %v2090_v16  ;;  %v1963_v30 = vadd.f32 %v1949_v7, %v1900_v4  ;;  %v2878_v16 = vld [vmem:[%s3896_s10] ss:$0 sm:$0xff] }
 0x497   : > { %v2100_v1 = vmax.f32 %v2096_v13, 0.0  ;;  %v2021_v24 = vadd.f32 %v2007_v2, %v1963_v30 }
 0x499   : > { %v2108_v57 = vpack.c.bf16 %v2100_v1, %v2100_v1  ;;  %v2079_v11 = vadd.f32 %v2065_v56, %v2021_v24 }
 0x49b   : > { %2713 = vmatmul.msk.bf16.vlgmr.msra.gmra.mxu3 %vm1814_vm3, %v2108_v57  ;;  %v2091_v32 = vadd.f32 %v3802_v15, %v2079_v11 }
 0x49c   : > { %v1951_v52 = vpop.f32.mrf.mxu3  ;;  %2197 = vmatpush.bf16.msra.mxu3 %v2822_v14 }
 0x49d   : > { %v1964_v59 = vadd.f32 %v1951_v52, %v1902_v21 }
 0x49f   : > { %v2022_v19 = vadd.f32 %v2009_v34, %v1964_v59 }
 0x4a0   : > { %2198 = vmatpush.bf16.msra.mxu3 %v2821_v10 }
 0x4a1   : > { %v2080_v29 = vadd.f32 %v2067_v8, %v2022_v19 }
 0x4a3   : > { %v2092_v49 = vadd.f32 %v3802_v15, %v2080_v29 }
 0x4a4   : > { %v1954_v26 = vpop.f32.mrf.mxu3 }
 0x4a5   : > { %v2097_v47 = vmax.f32 %v2091_v32, %v2092_v49  ;;  %v1965_v0 = vadd.f32 %v1954_v26, %v3792_v51  ;;  %v2823_v51 = vld [vmem:[%s3893_s7 + $0x30] sm:$0xff] }
 0x4a7   : > { %v2023_v23 = vadd.f32 %v2012_v28, %v1965_v0  ;;  %v2101_v5 = vmax.f32 %v2097_v47, 0.0 }
 0x4a9   : > { %v2081_v40 = vadd.f32 %v2070_v35, %v2023_v23  ;;  %v2170_v38 = vpack.c.bf16 %v2101_v5, %v2101_v5 }
 0x4ab   : > { %2722 = vmatmul.msk.bf16.vlgmr.msrb.gmra.mxu3 %vm1814_vm3, %v2103_v31  ;;  %v2093_v53 = vadd.f32 %v3802_v15, %v2081_v40 }
 0x4ac   : > { %v1956_v62 = vpop.f32.mrf.mxu3  ;;  %2232 = vmatpush.bf16.msrb.mxu3 %v2824_v12 }
 0x4ad   : > { %v1966_v18 = vadd.f32 %v1956_v62, %v1907_v20 }
 0x4af   : > { %v2024_v36 = vadd.f32 %v2014_v9, %v1966_v18 }
 0x4b0   : > { %2233 = vmatpush.bf16.msrb.mxu3 %v2823_v51 }
 0x4b1   : > { %v2082_v54 = vadd.f32 %v2072_v44, %v2024_v36 }
 0x4b3   : > { %v2094_v3 = vadd.f32 %v3802_v15, %v2082_v54 }
 0x4b5   : > { %v2098_v37 = vmax.f32 %v2093_v53, %v2094_v3 }
 0x4b7   : > { %v2102_v22 = vmax.f32 %v2098_v37, 0.0 }
 0x4b9   : > { %v2205_v33 = vpack.c.bf16 %v2102_v22, %v2102_v22 }
 0x4bb   : > { %2735 = vmatmul.msk.bf16.vlgmr.msra.gmra.mxu3 %vm1814_vm3, %v2170_v38 }
 0x4cb   : > { %2748 = vmatmul.msk.bf16.vlgmr.msrb.gmra.mxu3 %vm1814_vm3, %v2205_v33 }
 0x51e   : > { %v2138_v41 = vpop.f32.mrf.mxu3 }
 0x526   : > { %v2140_v43 = vpop.f32.mrf.mxu3 }
 0x52e   : > { %v2166_v63 = vpop.f32.mrf.mxu3 }
 0x52f   : > { %v2167_v48 = vadd.f32 %v2166_v63, %v2138_v41 }
 0x536   : > { %v2168_v15 = vpop.f32.mrf.mxu3 }
 0x53e   : > { %v2200_v17 = vpop.f32.mrf.mxu3 }
 0x53f   : > { %v2204_v6 = vadd.f32 %v2200_v17, %v2167_v48 }
 0x546   : > { %v2202_v50 = vpop.f32.mrf.mxu3 }
 0x54e   : > { %v2235_v60 = vpop.f32.mrf.mxu3 }
 0x54f   : > { %v2239_v61 = vadd.f32 %v2235_v60, %v2204_v6 }
 0x551   : > { %v2244_v46 = vadd.f32 %v2877_v45, %v2239_v61 }
 0x553   : > { %v2245_v55 = vmax.f32 %v2244_v46, 0.0 }
 0x555   : > { %v2246_v2 = vpack.c.bf16 %v2245_v55, %v2245_v55 }
 0x556   : > { %v2237_v58 = vpop.f32.mrf.mxu3 }
 0x557   : > { %2323 = vmatmul.bf16.vlgmr.msrb.gmra.mxu0 %v2246_v2 }
 0x5d4   : > { %v2324_v56 = vpop.f32.mrf.mxu0 }
 0x5d5   : > { %v2325_v7 = vadd.f32 %v2878_v16, %v2324_v56 }
 0x5d7   : > { %v2328_v4 = vadd.f32 %v2325_v7, %v2245_v55 }
 0x5d9   : > { %2329 = vst [vmem:[%s639_s29] sm:$0xff] %v2328_v4 }
 0x5da   : > { %2906 = shalt.err (!%p2903_p5)
}
 0x5db   : > { %2835 = dma.vmem_to_hbm [thread:$0]  (%p3041_p6), %s2344_s30, 128, %s2346_s0, %s2331_s1  }
 0x5dc   : > { %v2326_v13 = vpop.f32.mrf.mxu0 }
 0x5dd PF: > { %s2357_s25 = sand.u32 1, %s2929_s17   ;;  %p2838_p7 = pnand %p2413_p9, %p3045_p8 }
 0x5de   : > { %s2358_s24 = scalar_lea.sflag [#allocation4], %s2357_s25 }
 0x5df   : > { %p2839_p10 = pneg %p2838_p7 }
 0x5e1   : > { %2924 = dma.done.wait (%p2839_p10), %s2358_s24, 128  }
 0x5e2   : > { %2926 = vsyncadd (%p2839_p10), %s2358_s24, 4294967168  ;;  %p21_p11 = scmp.ge.s32.totalorder %s3026_s23, 4   ;;  %s3906_s17 = smov %s2933_s18 }
 0x5e3   : > { %s3907_s18 = smov %s2937_s19  ;;  %s3908_s19 = smov %s3039_s26 }
 0x5e4   : > { %s3909_s20 = smov %s3026_s23  ;;  %23 = sbr.rel (!%p21_p11) target bundleno = 7 (0x7), region = 153 }
 0x5e9   :  { %2364 = vsyncpa [#allocation4], 1 }
 0x5ea   :  { %2366 = vsyncpa [#allocation4 + $0x1], 1 }

</bundles_post_ra>
